<compile_context>
chip_gen: v7x
topology: tpu7x:2x2x1
jax: 0.10.0
libtpu: 0.0.40
codegen_flags: <defaults>
</compile_context>

<pallas_src>
import math
from functools import partial

import jax
import jax.numpy as jnp
from jax import lax
from jax.experimental import pallas as pl
from jax.experimental.pallas import tpu as pltpu


# -----------------------------------------------------------------------------
# Fused whole-stack kernel:  grid = (B,)
# -----------------------------------------------------------------------------
def _make_transformer_kernel(depth, heads, dim_head):
    hidden = heads * dim_head

    def kernel(x_ref, wproj_ref, cos_ref, sin_ref, wout_ref, bout_ref,
               lng_ref, lnb_ref, w1_ref, b1_ref, w2_ref, b2_ref, o_ref):
        f32 = jnp.float32

        x_cf = x_ref[0]                              # (dim, N)  channels-first tile
        c_dim, n_len = x_cf.shape
        in_dt = x_cf.dtype

        # ---- NCL -> NLC absorbed in-kernel: transpose via a tiny MXU matmul
        #      (identity contracted against the last dim -> no vector transpose).
        ii = lax.broadcasted_iota(jnp.int32, (n_len, n_len), 0)
        jj = lax.broadcasted_iota(jnp.int32, (n_len, n_len), 1)
        eye_n = (ii == jj).astype(in_dt)
        x = lax.dot_general(eye_n, x_cf, (((1,), (1,)), ((), ())),
                            preferred_element_type=f32)            # (N, dim)  f32

        cos = cos_ref[...].astype(f32)               # (N, hidden)
        sin = sin_ref[...].astype(f32)

        # Per-head lane masks (built once; full-width VPU multiplies replace
        # unaligned lane slices of the activations).
        lane = lax.broadcasted_iota(jnp.int32, (1, hidden), 1)
        head_masks = [((lane >= h * dim_head) & (lane < (h + 1) * dim_head)
                       ).astype(f32) for h in range(heads)]

        for l in range(depth):                       # static unroll over depth
            # ============================ Attention ==========================
            # One lane-dense projection: [q | q@rot | k | k@rot | v] -> 5*hidden
            # output lanes.  rotate_half and the 1/sqrt(dh) scale are already
            # folded into the weights.
            proj = jnp.dot(x.astype(in_dt), wproj_ref[l],
                           preferred_element_type=f32)             # (N, 5*hidden)
            q = proj[:, 0 * hidden:1 * hidden] * cos + proj[:, 1 * hidden:2 * hidden] * sin
            k = proj[:, 2 * hidden:3 * hidden] * cos + proj[:, 3 * hidden:4 * hidden] * sin
            v = proj[:, 4 * hidden:5 * hidden]

            # Per-head scores / softmax / PV (short unrolled loop, masked k/v).
            o_acc = jnp.zeros((n_len, hidden), f32)
            for h in range(heads):
                m = head_masks[h]
                sim = lax.dot_general(q, k * m, (((1,), (1,)), ((), ())),
                                      preferred_element_type=f32)  # (N, N)
                sim = sim - jnp.max(sim, axis=-1, keepdims=True)
                p = jnp.exp(sim)
                p = p * pl.reciprocal(jnp.sum(p, axis=-1, keepdims=True),
                                      approx=True)
                o_acc = o_acc + jnp.dot(p, v * m,
                                        preferred_element_type=f32)  # (N, hidden)

            # Single lane-dense output projection + bias + residual.
            x = x + jnp.dot(o_acc.astype(in_dt), wout_ref[l],
                            preferred_element_type=f32) + bout_ref[l].astype(f32)

            # ========================== FeedForward1d ========================
            mean = jnp.mean(x, axis=-1, keepdims=True)
            cent = x - mean
            var = jnp.mean(cent * cent, axis=-1, keepdims=True)     # unbiased=False
            norm = cent * lax.rsqrt(var + 1e-5)
            norm = norm * lng_ref[l].astype(f32) + lnb_ref[l].astype(f32)

            h1 = jnp.dot(norm.astype(in_dt), w1_ref[l],
                         preferred_element_type=f32) + b1_ref[l].astype(f32)
            # TODO(synk): torch nn.GELU() is the exact erf form; tanh approx used
            #             (erf has no guaranteed Mosaic lowering).
            cgelu = 0.7978845608028654  # sqrt(2/pi)
            h1 = 0.5 * h1 * (1.0 + jnp.tanh(cgelu * (h1 + 0.044715 * h1 * h1 * h1)))

            x = x + jnp.dot(h1.astype(in_dt), w2_ref[l],
                            preferred_element_type=f32) + b2_ref[l].astype(f32)

        # ---- NLC -> NCL absorbed at the exit, same MXU-transpose trick.
        kk = lax.broadcasted_iota(jnp.int32, (c_dim, c_dim), 0)
        ll = lax.broadcasted_iota(jnp.int32, (c_dim, c_dim), 1)
        eye_c = (kk == ll).astype(f32)
        o_ref[0] = lax.dot_general(eye_c, x, (((1,), (1,)), ((), ())),
                                   preferred_element_type=f32).astype(o_ref.dtype)

    return kernel


# -----------------------------------------------------------------------------
# Wrapper helpers
# -----------------------------------------------------------------------------
def _rotary_tables(n, dim_head, heads):
    """cos/sin tiled to (n, heads*dim_head) and the rotate-half matrix (dh, dh),
    matching RotaryEmbedding(dim=dim_head//2).rotate_queries_or_keys."""
    rot_dim = dim_head // 2
    inv_freq = 1.0 / (10000.0 ** (jnp.arange(0, rot_dim, 2, dtype=jnp.float32) / rot_dim))
    t = jnp.arange(n, dtype=jnp.float32)
    freqs = jnp.repeat(t[:, None] * inv_freq[None, :], 2, axis=-1)          # (n, rot_dim)
    cos = jnp.concatenate(
        [jnp.cos(freqs), jnp.ones((n, dim_head - rot_dim), jnp.float32)], axis=-1)
    sin = jnp.concatenate(
        [jnp.sin(freqs), jnp.zeros((n, dim_head - rot_dim), jnp.float32)], axis=-1)
    rot = jnp.zeros((dim_head, dim_head), jnp.float32)
    idx = jnp.arange(rot_dim // 2)
    rot = rot.at[2 * idx + 1, 2 * idx].set(-1.0)   # y[2i]   = -x[2i+1]
    rot = rot.at[2 * idx, 2 * idx + 1].set(1.0)    # y[2i+1] =  x[2i]
    return jnp.tile(cos, (1, heads)), jnp.tile(sin, (1, heads)), rot


def _prepare_params(layers, rot, *, heads, dim_head, dtype):
    """Stack per-layer PyTorch-layout weights into (depth, ...) arrays; fold
    rotate_half and the softmax scale into the fused qkv projection."""
    hidden = heads * dim_head
    scale = float(dim_head) ** -0.5
    wproj, wout, bout, lng, lnb, w1, b1, w2, b2 = ([] for _ in range(9))
    for p in layers:
        dim = p['to_qkv_w'].shape[1]
        w = p['to_qkv_w'][:, :, 0]                         # (3*hidden, dim)
        wq = w[:hidden].T                                  # (dim, hidden) head-major cols
        wk = w[hidden:2 * hidden].T
        wv = w[2 * hidden:].T

        def fold_rot(m):                                   # per-head  Wh @ R
            return (m.reshape(dim, heads, dim_head) @ rot).reshape(dim, hidden)

        wproj.append(jnp.concatenate(
            [wq * scale, fold_rot(wq) * scale, wk, fold_rot(wk), wv], axis=-1))
        wout.append(p['to_out_w'][:, :, 0].T)              # (hidden, dim)
        bout.append(p['to_out_b'].reshape(1, -1))
        lng.append(p['ln_g'].reshape(1, -1))
        lnb.append(p['ln_b'].reshape(1, -1))
        w1.append(p['ff_w1'][:, :, 0].T)                   # (dim, ffh)
        b1.append(p['ff_b1'].reshape(1, -1))
        w2.append(p['ff_w2'][:, :, 0].T)                   # (ffh, dim)
        b2.append(p['ff_b2'].reshape(1, -1))
    stack = lambda xs: jnp.stack(xs).astype(dtype)
    return tuple(map(stack, (wproj, wout, bout, lng, lnb, w1, b1, w2, b2)))


@partial(jax.jit, static_argnames=("heads", "dim_head"))
def transformer1d_forward(x_ncl, layers, *, heads=4, dim_head=32):
    """
    x_ncl:  (B, dim, N) -- PyTorch NCL layout, as Transformer1d.forward takes.
    layers: list of per-layer dicts with PyTorch-layout parameters (see __main__).
    returns (B, dim, N)
    """
    B, dim, N = x_ncl.shape
    depth = len(layers)
    hidden = heads * dim_head
    ffh = layers[0]['ff_w1'].shape[0]
    dtype = x_ncl.dtype

    cos_full, sin_full, rot = _rotary_tables(N, dim_head, heads)
    (wproj, wout, bout, lng, lnb, w1, b1, w2, b2) = _prepare_params(
        layers, rot, heads=heads, dim_head=dim_head, dtype=dtype)

    kernel = _make_transformer_kernel(depth, heads, dim_head)

    def full(shp):                                  # full-block, VMEM-resident weight
        return pl.BlockSpec(shp, lambda b: (0,) * len(shp))

    return pl.pallas_call(
        kernel,
        out_shape=jax.ShapeDtypeStruct((B, dim, N), dtype),
        grid_spec=pltpu.PrefetchScalarGridSpec(
            num_scalar_prefetch=0,
            grid=(B,),
            in_specs=[
                pl.BlockSpec((1, dim, N), lambda b: (b, 0, 0)),     # x (NCL)
                full((depth, dim, 5 * hidden)),                     # fused qkv(+rot, scaled)
                full((N, hidden)),                                  # cos (tiled per head)
                full((N, hidden)),                                  # sin
                full((depth, hidden, dim)),                         # Wout
                full((depth, 1, dim)),                              # out bias
                full((depth, 1, dim)),                              # LN g
                full((depth, 1, dim)),                              # LN b
                full((depth, dim, ffh)),                            # W1
                full((depth, 1, ffh)),                              # b1
                full((depth, ffh, dim)),                            # W2
                full((depth, 1, dim)),                              # b2
            ],
            out_specs=pl.BlockSpec((1, dim, N), lambda b: (b, 0, 0)),
        ),
        compiler_params=pltpu.CompilerParams(
            dimension_semantics=("parallel",)),                     # v7x: both TCs
    )(x_ncl, wproj, cos_full, sin_full, wout, bout, lng, lnb, w1, b1, w2, b2)


# -----------------------------------------------------------------------------
# Pure-JAX reference (mirrors the PyTorch forward) for a sanity check.
# -----------------------------------------------------------------------------
def _ref_rotary(t, cos, sin, rot_dim):
    t_mid, t_pass = t[..., :rot_dim], t[..., rot_dim:]
    tm = t_mid.reshape(*t_mid.shape[:-1], rot_dim // 2, 2)
    rh = jnp.stack((-tm[..., 1], tm[..., 0]), axis=-1).reshape(t_mid.shape)
    return jnp.concatenate([t_mid * cos + rh * sin, t_pass], axis=-1)


def _reference(x_ncl, layers, *, heads, dim_head):
    f32 = jnp.float32
    HI = jax.lax.Precision.HIGHEST
    B, dim, N = x_ncl.shape
    hidden = heads * dim_head
    rot_dim = dim_head // 2

    inv_freq = 1.0 / (10000.0 ** (jnp.arange(0, rot_dim, 2, dtype=f32) / rot_dim))
    freqs = jnp.repeat(jnp.arange(N, dtype=f32)[:, None] * inv_freq[None, :], 2, axis=-1)
    cos, sin = jnp.cos(freqs), jnp.sin(freqs)

    x = jnp.transpose(x_ncl, (0, 2, 1)).astype(f32)                 # (B, N, dim)
    for p in layers:
        # --- Attention + residual ---
        wqkv = p['to_qkv_w'][:, :, 0].astype(f32)
        qkv = jnp.einsum('bnc,oc->bno', x, wqkv, precision=HI)
        q, k, v = jnp.split(qkv, 3, axis=-1)
        split = lambda t: t.reshape(B, N, heads, dim_head).transpose(0, 2, 1, 3)
        q, k, v = split(q), split(k), split(v)
        q = _ref_rotary(q, cos, sin, rot_dim)
        k = _ref_rotary(k, cos, sin, rot_dim)
        sim = jnp.einsum('bhid,bhjd->bhij', q, k, precision=HI) * dim_head ** -0.5
        attn = jax.nn.softmax(sim, axis=-1)
        o = jnp.einsum('bhij,bhjd->bhid', attn, v, precision=HI)
        o = o.transpose(0, 2, 1, 3).reshape(B, N, hidden)
        wo = p['to_out_w'][:, :, 0].astype(f32)
        x = jnp.einsum('bnh,oh->bno', o, wo, precision=HI) + p['to_out_b'].astype(f32) + x
        # --- FeedForward1d + residual ---
        mean = jnp.mean(x, axis=-1, keepdims=True)
        var = jnp.mean((x - mean) ** 2, axis=-1, keepdims=True)
        nrm = (x - mean) * jax.lax.rsqrt(var + 1e-5)
        nrm = nrm * p['ln_g'][0, :, 0].astype(f32) + p['ln_b'][0, :, 0].astype(f32)
        w1 = p['ff_w1'][:, :, 0].astype(f32)
        h = jnp.einsum('bnc,fc->bnf', nrm, w1, precision=HI) + p['ff_b1'].astype(f32)
        c = 0.7978845608028654
        h = 0.5 * h * (1.0 + jnp.tanh(c * (h + 0.044715 * h ** 3)))
        w2 = p['ff_w2'][:, :, 0].astype(f32)
        x = jnp.einsum('bnf,of->bno', h, w2, precision=HI) + p['ff_b2'].astype(f32) + x
    return jnp.transpose(x, (0, 2, 1)).astype(x_ncl.dtype)


if __name__ == "__main__":
    # Transformer1d(dim=32, depth=2, heads=4, dim_head=32, mlp_dim=4):
    #   attention hidden = heads*dim_head = 128, ff hidden = dim*mlp_dim = 128.
    B, DIM, N = 2, 32, 16
    HEADS, DIM_HEAD, DEPTH, MLP_MULT = 4, 32, 2, 4
    HIDDEN = HEADS * DIM_HEAD
    FFH = DIM * MLP_MULT

    key = jax.random.PRNGKey(0)
    key, kx = jax.random.split(key)
    x = jax.random.normal(kx, (B, DIM, N), jnp.float32)

    layers = []
    s = 0.05
    for _ in range(DEPTH):
        key, *ks = jax.random.split(key, 8)
        layers.append(dict(
            to_qkv_w=s * jax.random.normal(ks[0], (3 * HIDDEN, DIM, 1), jnp.float32),
            to_out_w=s * jax.random.normal(ks[1], (DIM, HIDDEN, 1), jnp.float32),
            to_out_b=s * jax.random.normal(ks[2], (DIM,), jnp.float32),
            ln_g=jnp.ones((1, DIM, 1), jnp.float32),
            ln_b=jnp.zeros((1, DIM, 1), jnp.float32),
            ff_w1=s * jax.random.normal(ks[3], (FFH, DIM, 1), jnp.float32),
            ff_b1=s * jax.random.normal(ks[4], (FFH,), jnp.float32),
            ff_w2=s * jax.random.normal(ks[5], (DIM, FFH, 1), jnp.float32),
            ff_b2=s * jax.random.normal(ks[6], (DIM,), jnp.float32),
        ))

    out = jax.block_until_ready(
        transformer1d_forward(x, layers, heads=HEADS, dim_head=DIM_HEAD))
    ref = jax.block_until_ready(
        _reference(x, layers, heads=HEADS, dim_head=DIM_HEAD))

    assert out.shape == (B, DIM, N)
    err = float(jnp.max(jnp.abs(out - ref)))
    # Tolerance loosened slightly vs. the previous revision because the softmax
    # denominator now uses the approximate EUP reciprocal (per perf review).
    assert jnp.allclose(out, ref, atol=1e-3, rtol=1e-3), f"max abs err = {err}"
    print("KERNEL_OK")
</pallas_src>

<mosaic_0001>
module attributes {stable_mosaic.version = 11 : i64} {
  func.func @kernel(%arg0: i32, %arg1: memref<1x32x16xf32, #tpu.memory_space<vmem>>, %arg2: memref<2x32x640xf32, #tpu.memory_space<vmem>>, %arg3: memref<16x128xf32, #tpu.memory_space<vmem>>, %arg4: memref<16x128xf32, #tpu.memory_space<vmem>>, %arg5: memref<2x128x32xf32, #tpu.memory_space<vmem>>, %arg6: memref<2x1x32xf32, #tpu.memory_space<vmem>>, %arg7: memref<2x1x32xf32, #tpu.memory_space<vmem>>, %arg8: memref<2x1x32xf32, #tpu.memory_space<vmem>>, %arg9: memref<2x32x128xf32, #tpu.memory_space<vmem>>, %arg10: memref<2x1x128xf32, #tpu.memory_space<vmem>>, %arg11: memref<2x128x32xf32, #tpu.memory_space<vmem>>, %arg12: memref<2x1x32xf32, #tpu.memory_space<vmem>>, %arg13: memref<1x32x16xf32, #tpu.memory_space<vmem>>) attributes {dimension_semantics = [#tpu.dimension_semantics<parallel>], iteration_bounds = array<i64: 2>, scalar_prefetch = 0 : i64, scratch_operands = 0 : i64, tpu.core_type = #tpu.core_type<tc>, window_params = [{transform_indices = @transform_0, window_bounds = array<i64: 1, 32, 16>}, {pipeline_mode = #tpu.pipeline_mode<synchronous>, transform_indices = @transform_1, window_bounds = array<i64: 2, 32, 640>}, {pipeline_mode = #tpu.pipeline_mode<synchronous>, transform_indices = @transform_2, window_bounds = array<i64: 16, 128>}, {pipeline_mode = #tpu.pipeline_mode<synchronous>, transform_indices = @transform_3, window_bounds = array<i64: 16, 128>}, {pipeline_mode = #tpu.pipeline_mode<synchronous>, transform_indices = @transform_4, window_bounds = array<i64: 2, 128, 32>}, {pipeline_mode = #tpu.pipeline_mode<synchronous>, transform_indices = @transform_5, window_bounds = array<i64: 2, 1, 32>}, {pipeline_mode = #tpu.pipeline_mode<synchronous>, transform_indices = @transform_6, window_bounds = array<i64: 2, 1, 32>}, {pipeline_mode = #tpu.pipeline_mode<synchronous>, transform_indices = @transform_7, window_bounds = array<i64: 2, 1, 32>}, {pipeline_mode = #tpu.pipeline_mode<synchronous>, transform_indices = @transform_8, window_bounds = array<i64: 2, 32, 128>}, {pipeline_mode = #tpu.pipeline_mode<synchronous>, transform_indices = @transform_9, window_bounds = array<i64: 2, 1, 128>}, {pipeline_mode = #tpu.pipeline_mode<synchronous>, transform_indices = @transform_10, window_bounds = array<i64: 2, 128, 32>}, {pipeline_mode = #tpu.pipeline_mode<synchronous>, transform_indices = @transform_11, window_bounds = array<i64: 2, 1, 32>}, {transform_indices = @transform_12, window_bounds = array<i64: 1, 32, 16>}]} {
    %c0 = arith.constant 0 : index
    %c0_0 = arith.constant 0 : index
    %c0_1 = arith.constant 0 : index
    %0 = vector.load %arg1[%c0, %c0_0, %c0_1] : memref<1x32x16xf32, #tpu.memory_space<vmem>>, vector<1x32x16xf32>
    %1 = vector.shape_cast %0 : vector<1x32x16xf32> to vector<32x16xf32>
    %2 = tpu.iota {dimensions = array<i32: 0>} : vector<16x16xi32>
    %3 = tpu.iota {dimensions = array<i32: 1>} : vector<16x16xi32>
    %4 = arith.cmpi eq, %2, %3 : vector<16x16xi32>
    %5 = arith.extui %4 : vector<16x16xi1> to vector<16x16xi32>
    %6 = arith.sitofp %5 : vector<16x16xi32> to vector<16x16xf32>
    %cst = arith.constant dense<0.000000e+00> : vector<16x32xf32>
    %7 = tpu.matmul %6, %1, %cst {dimension_numbers = #tpu.dot_dimension_numbers<[1], [1], [0], [0], [0, 0, 1, 0], [], []>} : vector<16x16xf32>, vector<32x16xf32>, vector<16x32xf32> -> vector<16x32xf32>
    %c0_2 = arith.constant 0 : index
    %c0_3 = arith.constant 0 : index
    %8 = vector.load %arg3[%c0_2, %c0_3] : memref<16x128xf32, #tpu.memory_space<vmem>>, vector<16x128xf32>
    %c0_4 = arith.constant 0 : index
    %c0_5 = arith.constant 0 : index
    %9 = vector.load %arg4[%c0_4, %c0_5] : memref<16x128xf32, #tpu.memory_space<vmem>>, vector<16x128xf32>
    %10 = tpu.iota {dimensions = array<i32: 1>} : vector<1x128xi32>
    %c0_i32 = arith.constant 0 : i32
    %11 = vector.broadcast %c0_i32 : i32 to vector<1x128xi32>
    %12 = arith.cmpi sge, %10, %11 : vector<1x128xi32>
    %c32_i32 = arith.constant 32 : i32
    %13 = vector.broadcast %c32_i32 : i32 to vector<1x128xi32>
    %14 = arith.cmpi slt, %10, %13 : vector<1x128xi32>
    %15 = arith.andi %12, %14 : vector<1x128xi1>
    %16 = arith.extui %15 : vector<1x128xi1> to vector<1x128xi32>
    %17 = arith.sitofp %16 : vector<1x128xi32> to vector<1x128xf32>
    %c32_i32_6 = arith.constant 32 : i32
    %18 = vector.broadcast %c32_i32_6 : i32 to vector<1x128xi32>
    %19 = arith.cmpi sge, %10, %18 : vector<1x128xi32>
    %c64_i32 = arith.constant 64 : i32
    %20 = vector.broadcast %c64_i32 : i32 to vector<1x128xi32>
    %21 = arith.cmpi slt, %10, %20 : vector<1x128xi32>
    %22 = arith.andi %19, %21 : vector<1x128xi1>
    %23 = arith.extui %22 : vector<1x128xi1> to vector<1x128xi32>
    %24 = arith.sitofp %23 : vector<1x128xi32> to vector<1x128xf32>
    %c64_i32_7 = arith.constant 64 : i32
    %25 = vector.broadcast %c64_i32_7 : i32 to vector<1x128xi32>
    %26 = arith.cmpi sge, %10, %25 : vector<1x128xi32>
    %c96_i32 = arith.constant 96 : i32
    %27 = vector.broadcast %c96_i32 : i32 to vector<1x128xi32>
    %28 = arith.cmpi slt, %10, %27 : vector<1x128xi32>
    %29 = arith.andi %26, %28 : vector<1x128xi1>
    %30 = arith.extui %29 : vector<1x128xi1> to vector<1x128xi32>
    %31 = arith.sitofp %30 : vector<1x128xi32> to vector<1x128xf32>
    %c96_i32_8 = arith.constant 96 : i32
    %32 = vector.broadcast %c96_i32_8 : i32 to vector<1x128xi32>
    %33 = arith.cmpi sge, %10, %32 : vector<1x128xi32>
    %c128_i32 = arith.constant 128 : i32
    %34 = vector.broadcast %c128_i32 : i32 to vector<1x128xi32>
    %35 = arith.cmpi slt, %10, %34 : vector<1x128xi32>
    %36 = arith.andi %33, %35 : vector<1x128xi1>
    %37 = arith.extui %36 : vector<1x128xi1> to vector<1x128xi32>
    %38 = arith.sitofp %37 : vector<1x128xi32> to vector<1x128xf32>
    %c0_9 = arith.constant 0 : index
    %c0_10 = arith.constant 0 : index
    %c0_11 = arith.constant 0 : index
    %39 = vector.load %arg2[%c0_9, %c0_10, %c0_11] : memref<2x32x640xf32, #tpu.memory_space<vmem>>, vector<1x32x640xf32>
    %40 = vector.shape_cast %39 : vector<1x32x640xf32> to vector<32x640xf32>
    %cst_12 = arith.constant dense<0.000000e+00> : vector<16x640xf32>
    %41 = tpu.matmul %7, %40, %cst_12 {dimension_numbers = #tpu.dot_dimension_numbers<[1], [0], [0], [1], [0, 0, 1, 1], [], []>} : vector<16x32xf32>, vector<32x640xf32>, vector<16x640xf32> -> vector<16x640xf32>
    %42 = vector.extract_strided_slice %41 {offsets = [0, 0], sizes = [16, 128], strides = [1, 1]} : vector<16x640xf32> to vector<16x128xf32>
    %43 = arith.mulf %42, %8 : vector<16x128xf32>
    %44 = vector.extract_strided_slice %41 {offsets = [0, 128], sizes = [16, 128], strides = [1, 1]} : vector<16x640xf32> to vector<16x128xf32>
    %45 = arith.mulf %44, %9 : vector<16x128xf32>
    %46 = arith.addf %43, %45 : vector<16x128xf32>
    %47 = vector.extract_strided_slice %41 {offsets = [0, 256], sizes = [16, 128], strides = [1, 1]} : vector<16x640xf32> to vector<16x128xf32>
    %48 = arith.mulf %47, %8 : vector<16x128xf32>
    %49 = vector.extract_strided_slice %41 {offsets = [0, 384], sizes = [16, 128], strides = [1, 1]} : vector<16x640xf32> to vector<16x128xf32>
    %50 = arith.mulf %49, %9 : vector<16x128xf32>
    %51 = arith.addf %48, %50 : vector<16x128xf32>
    %52 = vector.extract_strided_slice %41 {offsets = [0, 512], sizes = [16, 128], strides = [1, 1]} : vector<16x640xf32> to vector<16x128xf32>
    %cst_13 = arith.constant 0.000000e+00 : f32
    %53 = vector.broadcast %cst_13 : f32 to vector<16x128xf32>
    %54 = vector.broadcast %17 : vector<1x128xf32> to vector<16x128xf32>
    %55 = arith.mulf %51, %54 : vector<16x128xf32>
    %cst_14 = arith.constant dense<0.000000e+00> : vector<16x16xf32>
    %56 = tpu.matmul %46, %55, %cst_14 {dimension_numbers = #tpu.dot_dimension_numbers<[1], [1], [0], [0], [0, 0, 1, 0], [], []>} : vector<16x128xf32>, vector<16x128xf32>, vector<16x16xf32> -> vector<16x16xf32>
    %cst_15 = arith.constant dense<0xFF800000> : vector<16xf32>
    %57 = vector.multi_reduction <maximumf>, %56, %cst_15 [1] : vector<16x16xf32> to vector<16xf32>
    %58 = vector.shape_cast %57 : vector<16xf32> to vector<16x1xf32>
    %59 = vector.broadcast %58 : vector<16x1xf32> to vector<16x16xf32>
    %60 = arith.subf %56, %59 : vector<16x16xf32>
    %61 = math.exp %60 : vector<16x16xf32>
    %cst_16 = arith.constant dense<0.000000e+00> : vector<16xf32>
    %62 = vector.multi_reduction <add>, %61, %cst_16 [1] : vector<16x16xf32> to vector<16xf32>
    %63 = vector.shape_cast %62 : vector<16xf32> to vector<16x1xf32>
    %64 = tpu.reciprocal %63 {approx = true} : vector<16x1xf32> -> vector<16x1xf32>
    %65 = vector.broadcast %64 : vector<16x1xf32> to vector<16x16xf32>
    %66 = arith.mulf %61, %65 : vector<16x16xf32>
    %67 = vector.broadcast %17 : vector<1x128xf32> to vector<16x128xf32>
    %68 = arith.mulf %52, %67 : vector<16x128xf32>
    %cst_17 = arith.constant dense<0.000000e+00> : vector<16x128xf32>
    %69 = tpu.matmul %66, %68, %cst_17 {dimension_numbers = #tpu.dot_dimension_numbers<[1], [0], [0], [1], [0, 0, 1, 1], [], []>} : vector<16x16xf32>, vector<16x128xf32>, vector<16x128xf32> -> vector<16x128xf32>
    %70 = arith.addf %53, %69 : vector<16x128xf32>
    %71 = vector.broadcast %24 : vector<1x128xf32> to vector<16x128xf32>
    %72 = arith.mulf %51, %71 : vector<16x128xf32>
    %cst_18 = arith.constant dense<0.000000e+00> : vector<16x16xf32>
    %73 = tpu.matmul %46, %72, %cst_18 {dimension_numbers = #tpu.dot_dimension_numbers<[1], [1], [0], [0], [0, 0, 1, 0], [], []>} : vector<16x128xf32>, vector<16x128xf32>, vector<16x16xf32> -> vector<16x16xf32>
    %cst_19 = arith.constant dense<0xFF800000> : vector<16xf32>
    %74 = vector.multi_reduction <maximumf>, %73, %cst_19 [1] : vector<16x16xf32> to vector<16xf32>
    %75 = vector.shape_cast %74 : vector<16xf32> to vector<16x1xf32>
    %76 = vector.broadcast %75 : vector<16x1xf32> to vector<16x16xf32>
    %77 = arith.subf %73, %76 : vector<16x16xf32>
    %78 = math.exp %77 : vector<16x16xf32>
    %cst_20 = arith.constant dense<0.000000e+00> : vector<16xf32>
    %79 = vector.multi_reduction <add>, %78, %cst_20 [1] : vector<16x16xf32> to vector<16xf32>
    %80 = vector.shape_cast %79 : vector<16xf32> to vector<16x1xf32>
    %81 = tpu.reciprocal %80 {approx = true} : vector<16x1xf32> -> vector<16x1xf32>
    %82 = vector.broadcast %81 : vector<16x1xf32> to vector<16x16xf32>
    %83 = arith.mulf %78, %82 : vector<16x16xf32>
    %84 = vector.broadcast %24 : vector<1x128xf32> to vector<16x128xf32>
    %85 = arith.mulf %52, %84 : vector<16x128xf32>
    %cst_21 = arith.constant dense<0.000000e+00> : vector<16x128xf32>
    %86 = tpu.matmul %83, %85, %cst_21 {dimension_numbers = #tpu.dot_dimension_numbers<[1], [0], [0], [1], [0, 0, 1, 1], [], []>} : vector<16x16xf32>, vector<16x128xf32>, vector<16x128xf32> -> vector<16x128xf32>
    %87 = arith.addf %70, %86 : vector<16x128xf32>
    %88 = vector.broadcast %31 : vector<1x128xf32> to vector<16x128xf32>
    %89 = arith.mulf %51, %88 : vector<16x128xf32>
    %cst_22 = arith.constant dense<0.000000e+00> : vector<16x16xf32>
    %90 = tpu.matmul %46, %89, %cst_22 {dimension_numbers = #tpu.dot_dimension_numbers<[1], [1], [0], [0], [0, 0, 1, 0], [], []>} : vector<16x128xf32>, vector<16x128xf32>, vector<16x16xf32> -> vector<16x16xf32>
    %cst_23 = arith.constant dense<0xFF800000> : vector<16xf32>
    %91 = vector.multi_reduction <maximumf>, %90, %cst_23 [1] : vector<16x16xf32> to vector<16xf32>
    %92 = vector.shape_cast %91 : vector<16xf32> to vector<16x1xf32>
    %93 = vector.broadcast %92 : vector<16x1xf32> to vector<16x16xf32>
    %94 = arith.subf %90, %93 : vector<16x16xf32>
    %95 = math.exp %94 : vector<16x16xf32>
    %cst_24 = arith.constant dense<0.000000e+00> : vector<16xf32>
    %96 = vector.multi_reduction <add>, %95, %cst_24 [1] : vector<16x16xf32> to vector<16xf32>
    %97 = vector.shape_cast %96 : vector<16xf32> to vector<16x1xf32>
    %98 = tpu.reciprocal %97 {approx = true} : vector<16x1xf32> -> vector<16x1xf32>
    %99 = vector.broadcast %98 : vector<16x1xf32> to vector<16x16xf32>
    %100 = arith.mulf %95, %99 : vector<16x16xf32>
    %101 = vector.broadcast %31 : vector<1x128xf32> to vector<16x128xf32>
    %102 = arith.mulf %52, %101 : vector<16x128xf32>
    %cst_25 = arith.constant dense<0.000000e+00> : vector<16x128xf32>
    %103 = tpu.matmul %100, %102, %cst_25 {dimension_numbers = #tpu.dot_dimension_numbers<[1], [0], [0], [1], [0, 0, 1, 1], [], []>} : vector<16x16xf32>, vector<16x128xf32>, vector<16x128xf32> -> vector<16x128xf32>
    %104 = arith.addf %87, %103 : vector<16x128xf32>
    %105 = vector.broadcast %38 : vector<1x128xf32> to vector<16x128xf32>
    %106 = arith.mulf %51, %105 : vector<16x128xf32>
    %cst_26 = arith.constant dense<0.000000e+00> : vector<16x16xf32>
    %107 = tpu.matmul %46, %106, %cst_26 {dimension_numbers = #tpu.dot_dimension_numbers<[1], [1], [0], [0], [0, 0, 1, 0], [], []>} : vector<16x128xf32>, vector<16x128xf32>, vector<16x16xf32> -> vector<16x16xf32>
    %cst_27 = arith.constant dense<0xFF800000> : vector<16xf32>
    %108 = vector.multi_reduction <maximumf>, %107, %cst_27 [1] : vector<16x16xf32> to vector<16xf32>
    %109 = vector.shape_cast %108 : vector<16xf32> to vector<16x1xf32>
    %110 = vector.broadcast %109 : vector<16x1xf32> to vector<16x16xf32>
    %111 = arith.subf %107, %110 : vector<16x16xf32>
    %112 = math.exp %111 : vector<16x16xf32>
    %cst_28 = arith.constant dense<0.000000e+00> : vector<16xf32>
    %113 = vector.multi_reduction <add>, %112, %cst_28 [1] : vector<16x16xf32> to vector<16xf32>
    %114 = vector.shape_cast %113 : vector<16xf32> to vector<16x1xf32>
    %115 = tpu.reciprocal %114 {approx = true} : vector<16x1xf32> -> vector<16x1xf32>
    %116 = vector.broadcast %115 : vector<16x1xf32> to vector<16x16xf32>
    %117 = arith.mulf %112, %116 : vector<16x16xf32>
    %118 = vector.broadcast %38 : vector<1x128xf32> to vector<16x128xf32>
    %119 = arith.mulf %52, %118 : vector<16x128xf32>
    %cst_29 = arith.constant dense<0.000000e+00> : vector<16x128xf32>
    %120 = tpu.matmul %117, %119, %cst_29 {dimension_numbers = #tpu.dot_dimension_numbers<[1], [0], [0], [1], [0, 0, 1, 1], [], []>} : vector<16x16xf32>, vector<16x128xf32>, vector<16x128xf32> -> vector<16x128xf32>
    %121 = arith.addf %104, %120 : vector<16x128xf32>
    %c0_30 = arith.constant 0 : index
    %c0_31 = arith.constant 0 : index
    %c0_32 = arith.constant 0 : index
    %122 = vector.load %arg5[%c0_30, %c0_31, %c0_32] : memref<2x128x32xf32, #tpu.memory_space<vmem>>, vector<1x128x32xf32>
    %123 = vector.shape_cast %122 : vector<1x128x32xf32> to vector<128x32xf32>
    %cst_33 = arith.constant dense<0.000000e+00> : vector<16x32xf32>
    %124 = tpu.matmul %121, %123, %cst_33 {dimension_numbers = #tpu.dot_dimension_numbers<[1], [0], [0], [1], [0, 0, 1, 1], [], []>} : vector<16x128xf32>, vector<128x32xf32>, vector<16x32xf32> -> vector<16x32xf32>
    %125 = arith.addf %7, %124 : vector<16x32xf32>
    %c0_34 = arith.constant 0 : index
    %c0_35 = arith.constant 0 : index
    %c0_36 = arith.constant 0 : index
    %126 = vector.load %arg6[%c0_34, %c0_35, %c0_36] : memref<2x1x32xf32, #tpu.memory_space<vmem>>, vector<1x1x32xf32>
    %127 = vector.shape_cast %126 : vector<1x1x32xf32> to vector<1x32xf32>
    %128 = vector.broadcast %127 : vector<1x32xf32> to vector<16x32xf32>
    %129 = arith.addf %125, %128 : vector<16x32xf32>
    %cst_37 = arith.constant dense<0.000000e+00> : vector<16xf32>
    %130 = vector.multi_reduction <add>, %129, %cst_37 [1] : vector<16x32xf32> to vector<16xf32>
    %131 = vector.shape_cast %130 : vector<16xf32> to vector<16x1xf32>
    %cst_38 = arith.constant 3.200000e+01 : f32
    %132 = vector.broadcast %cst_38 : f32 to vector<16x1xf32>
    %133 = arith.divf %131, %132 : vector<16x1xf32>
    %134 = vector.broadcast %133 : vector<16x1xf32> to vector<16x32xf32>
    %135 = arith.subf %129, %134 : vector<16x32xf32>
    %136 = arith.mulf %135, %135 : vector<16x32xf32>
    %cst_39 = arith.constant dense<0.000000e+00> : vector<16xf32>
    %137 = vector.multi_reduction <add>, %136, %cst_39 [1] : vector<16x32xf32> to vector<16xf32>
    %138 = vector.shape_cast %137 : vector<16xf32> to vector<16x1xf32>
    %cst_40 = arith.constant 3.200000e+01 : f32
    %139 = vector.broadcast %cst_40 : f32 to vector<16x1xf32>
    %140 = arith.divf %138, %139 : vector<16x1xf32>
    %cst_41 = arith.constant 9.99999974E-6 : f32
    %141 = vector.broadcast %cst_41 : f32 to vector<16x1xf32>
    %142 = arith.addf %140, %141 : vector<16x1xf32>
    %143 = math.rsqrt %142 : vector<16x1xf32>
    %144 = vector.broadcast %143 : vector<16x1xf32> to vector<16x32xf32>
    %145 = arith.mulf %135, %144 : vector<16x32xf32>
    %c0_42 = arith.constant 0 : index
    %c0_43 = arith.constant 0 : index
    %c0_44 = arith.constant 0 : index
    %146 = vector.load %arg7[%c0_42, %c0_43, %c0_44] : memref<2x1x32xf32, #tpu.memory_space<vmem>>, vector<1x1x32xf32>
    %147 = vector.shape_cast %146 : vector<1x1x32xf32> to vector<1x32xf32>
    %148 = vector.broadcast %147 : vector<1x32xf32> to vector<16x32xf32>
    %149 = arith.mulf %145, %148 : vector<16x32xf32>
    %c0_45 = arith.constant 0 : index
    %c0_46 = arith.constant 0 : index
    %c0_47 = arith.constant 0 : index
    %150 = vector.load %arg8[%c0_45, %c0_46, %c0_47] : memref<2x1x32xf32, #tpu.memory_space<vmem>>, vector<1x1x32xf32>
    %151 = vector.shape_cast %150 : vector<1x1x32xf32> to vector<1x32xf32>
    %152 = vector.broadcast %151 : vector<1x32xf32> to vector<16x32xf32>
    %153 = arith.addf %149, %152 : vector<16x32xf32>
    %c0_48 = arith.constant 0 : index
    %c0_49 = arith.constant 0 : index
    %c0_50 = arith.constant 0 : index
    %154 = vector.load %arg9[%c0_48, %c0_49, %c0_50] : memref<2x32x128xf32, #tpu.memory_space<vmem>>, vector<1x32x128xf32>
    %155 = vector.shape_cast %154 : vector<1x32x128xf32> to vector<32x128xf32>
    %cst_51 = arith.constant dense<0.000000e+00> : vector<16x128xf32>
    %156 = tpu.matmul %153, %155, %cst_51 {dimension_numbers = #tpu.dot_dimension_numbers<[1], [0], [0], [1], [0, 0, 1, 1], [], []>} : vector<16x32xf32>, vector<32x128xf32>, vector<16x128xf32> -> vector<16x128xf32>
    %c0_52 = arith.constant 0 : index
    %c0_53 = arith.constant 0 : index
    %c0_54 = arith.constant 0 : index
    %157 = vector.load %arg10[%c0_52, %c0_53, %c0_54] : memref<2x1x128xf32, #tpu.memory_space<vmem>>, vector<1x1x128xf32>
    %158 = vector.shape_cast %157 : vector<1x1x128xf32> to vector<1x128xf32>
    %159 = vector.broadcast %158 : vector<1x128xf32> to vector<16x128xf32>
    %160 = arith.addf %156, %159 : vector<16x128xf32>
    %cst_55 = arith.constant 5.000000e-01 : f32
    %161 = vector.broadcast %cst_55 : f32 to vector<16x128xf32>
    %162 = arith.mulf %161, %160 : vector<16x128xf32>
    %cst_56 = arith.constant 4.471500e-02 : f32
    %163 = vector.broadcast %cst_56 : f32 to vector<16x128xf32>
    %164 = arith.mulf %163, %160 : vector<16x128xf32>
    %165 = arith.mulf %164, %160 : vector<16x128xf32>
    %166 = arith.mulf %165, %160 : vector<16x128xf32>
    %167 = arith.addf %160, %166 : vector<16x128xf32>
    %cst_57 = arith.constant 0.797884583 : f32
    %168 = vector.broadcast %cst_57 : f32 to vector<16x128xf32>
    %169 = arith.mulf %168, %167 : vector<16x128xf32>
    %170 = math.tanh %169 : vector<16x128xf32>
    %cst_58 = arith.constant 1.000000e+00 : f32
    %171 = vector.broadcast %cst_58 : f32 to vector<16x128xf32>
    %172 = arith.addf %171, %170 : vector<16x128xf32>
    %173 = arith.mulf %162, %172 : vector<16x128xf32>
    %c0_59 = arith.constant 0 : index
    %c0_60 = arith.constant 0 : index
    %c0_61 = arith.constant 0 : index
    %174 = vector.load %arg11[%c0_59, %c0_60, %c0_61] : memref<2x128x32xf32, #tpu.memory_space<vmem>>, vector<1x128x32xf32>
    %175 = vector.shape_cast %174 : vector<1x128x32xf32> to vector<128x32xf32>
    %cst_62 = arith.constant dense<0.000000e+00> : vector<16x32xf32>
    %176 = tpu.matmul %173, %175, %cst_62 {dimension_numbers = #tpu.dot_dimension_numbers<[1], [0], [0], [1], [0, 0, 1, 1], [], []>} : vector<16x128xf32>, vector<128x32xf32>, vector<16x32xf32> -> vector<16x32xf32>
    %177 = arith.addf %129, %176 : vector<16x32xf32>
    %c0_63 = arith.constant 0 : index
    %c0_64 = arith.constant 0 : index
    %c0_65 = arith.constant 0 : index
    %178 = vector.load %arg12[%c0_63, %c0_64, %c0_65] : memref<2x1x32xf32, #tpu.memory_space<vmem>>, vector<1x1x32xf32>
    %179 = vector.shape_cast %178 : vector<1x1x32xf32> to vector<1x32xf32>
    %180 = vector.broadcast %179 : vector<1x32xf32> to vector<16x32xf32>
    %181 = arith.addf %177, %180 : vector<16x32xf32>
    %c1 = arith.constant 1 : index
    %c0_66 = arith.constant 0 : index
    %c0_67 = arith.constant 0 : index
    %182 = vector.load %arg2[%c1, %c0_66, %c0_67] : memref<2x32x640xf32, #tpu.memory_space<vmem>>, vector<1x32x640xf32>
    %183 = vector.shape_cast %182 : vector<1x32x640xf32> to vector<32x640xf32>
    %cst_68 = arith.constant dense<0.000000e+00> : vector<16x640xf32>
    %184 = tpu.matmul %181, %183, %cst_68 {dimension_numbers = #tpu.dot_dimension_numbers<[1], [0], [0], [1], [0, 0, 1, 1], [], []>} : vector<16x32xf32>, vector<32x640xf32>, vector<16x640xf32> -> vector<16x640xf32>
    %185 = vector.extract_strided_slice %184 {offsets = [0, 0], sizes = [16, 128], strides = [1, 1]} : vector<16x640xf32> to vector<16x128xf32>
    %186 = arith.mulf %185, %8 : vector<16x128xf32>
    %187 = vector.extract_strided_slice %184 {offsets = [0, 128], sizes = [16, 128], strides = [1, 1]} : vector<16x640xf32> to vector<16x128xf32>
    %188 = arith.mulf %187, %9 : vector<16x128xf32>
    %189 = arith.addf %186, %188 : vector<16x128xf32>
    %190 = vector.extract_strided_slice %184 {offsets = [0, 256], sizes = [16, 128], strides = [1, 1]} : vector<16x640xf32> to vector<16x128xf32>
    %191 = arith.mulf %190, %8 : vector<16x128xf32>
    %192 = vector.extract_strided_slice %184 {offsets = [0, 384], sizes = [16, 128], strides = [1, 1]} : vector<16x640xf32> to vector<16x128xf32>
    %193 = arith.mulf %192, %9 : vector<16x128xf32>
    %194 = arith.addf %191, %193 : vector<16x128xf32>
    %195 = vector.extract_strided_slice %184 {offsets = [0, 512], sizes = [16, 128], strides = [1, 1]} : vector<16x640xf32> to vector<16x128xf32>
    %cst_69 = arith.constant 0.000000e+00 : f32
    %196 = vector.broadcast %cst_69 : f32 to vector<16x128xf32>
    %197 = vector.broadcast %17 : vector<1x128xf32> to vector<16x128xf32>
    %198 = arith.mulf %194, %197 : vector<16x128xf32>
    %cst_70 = arith.constant dense<0.000000e+00> : vector<16x16xf32>
    %199 = tpu.matmul %189, %198, %cst_70 {dimension_numbers = #tpu.dot_dimension_numbers<[1], [1], [0], [0], [0, 0, 1, 0], [], []>} : vector<16x128xf32>, vector<16x128xf32>, vector<16x16xf32> -> vector<16x16xf32>
    %cst_71 = arith.constant dense<0xFF800000> : vector<16xf32>
    %200 = vector.multi_reduction <maximumf>, %199, %cst_71 [1] : vector<16x16xf32> to vector<16xf32>
    %201 = vector.shape_cast %200 : vector<16xf32> to vector<16x1xf32>
    %202 = vector.broadcast %201 : vector<16x1xf32> to vector<16x16xf32>
    %203 = arith.subf %199, %202 : vector<16x16xf32>
    %204 = math.exp %203 : vector<16x16xf32>
    %cst_72 = arith.constant dense<0.000000e+00> : vector<16xf32>
    %205 = vector.multi_reduction <add>, %204, %cst_72 [1] : vector<16x16xf32> to vector<16xf32>
    %206 = vector.shape_cast %205 : vector<16xf32> to vector<16x1xf32>
    %207 = tpu.reciprocal %206 {approx = true} : vector<16x1xf32> -> vector<16x1xf32>
    %208 = vector.broadcast %207 : vector<16x1xf32> to vector<16x16xf32>
    %209 = arith.mulf %204, %208 : vector<16x16xf32>
    %210 = vector.broadcast %17 : vector<1x128xf32> to vector<16x128xf32>
    %211 = arith.mulf %195, %210 : vector<16x128xf32>
    %cst_73 = arith.constant dense<0.000000e+00> : vector<16x128xf32>
    %212 = tpu.matmul %209, %211, %cst_73 {dimension_numbers = #tpu.dot_dimension_numbers<[1], [0], [0], [1], [0, 0, 1, 1], [], []>} : vector<16x16xf32>, vector<16x128xf32>, vector<16x128xf32> -> vector<16x128xf32>
    %213 = arith.addf %196, %212 : vector<16x128xf32>
    %214 = vector.broadcast %24 : vector<1x128xf32> to vector<16x128xf32>
    %215 = arith.mulf %194, %214 : vector<16x128xf32>
    %cst_74 = arith.constant dense<0.000000e+00> : vector<16x16xf32>
    %216 = tpu.matmul %189, %215, %cst_74 {dimension_numbers = #tpu.dot_dimension_numbers<[1], [1], [0], [0], [0, 0, 1, 0], [], []>} : vector<16x128xf32>, vector<16x128xf32>, vector<16x16xf32> -> vector<16x16xf32>
    %cst_75 = arith.constant dense<0xFF800000> : vector<16xf32>
    %217 = vector.multi_reduction <maximumf>, %216, %cst_75 [1] : vector<16x16xf32> to vector<16xf32>
    %218 = vector.shape_cast %217 : vector<16xf32> to vector<16x1xf32>
    %219 = vector.broadcast %218 : vector<16x1xf32> to vector<16x16xf32>
    %220 = arith.subf %216, %219 : vector<16x16xf32>
    %221 = math.exp %220 : vector<16x16xf32>
    %cst_76 = arith.constant dense<0.000000e+00> : vector<16xf32>
    %222 = vector.multi_reduction <add>, %221, %cst_76 [1] : vector<16x16xf32> to vector<16xf32>
    %223 = vector.shape_cast %222 : vector<16xf32> to vector<16x1xf32>
    %224 = tpu.reciprocal %223 {approx = true} : vector<16x1xf32> -> vector<16x1xf32>
    %225 = vector.broadcast %224 : vector<16x1xf32> to vector<16x16xf32>
    %226 = arith.mulf %221, %225 : vector<16x16xf32>
    %227 = vector.broadcast %24 : vector<1x128xf32> to vector<16x128xf32>
    %228 = arith.mulf %195, %227 : vector<16x128xf32>
    %cst_77 = arith.constant dense<0.000000e+00> : vector<16x128xf32>
    %229 = tpu.matmul %226, %228, %cst_77 {dimension_numbers = #tpu.dot_dimension_numbers<[1], [0], [0], [1], [0, 0, 1, 1], [], []>} : vector<16x16xf32>, vector<16x128xf32>, vector<16x128xf32> -> vector<16x128xf32>
    %230 = arith.addf %213, %229 : vector<16x128xf32>
    %231 = vector.broadcast %31 : vector<1x128xf32> to vector<16x128xf32>
    %232 = arith.mulf %194, %231 : vector<16x128xf32>
    %cst_78 = arith.constant dense<0.000000e+00> : vector<16x16xf32>
    %233 = tpu.matmul %189, %232, %cst_78 {dimension_numbers = #tpu.dot_dimension_numbers<[1], [1], [0], [0], [0, 0, 1, 0], [], []>} : vector<16x128xf32>, vector<16x128xf32>, vector<16x16xf32> -> vector<16x16xf32>
    %cst_79 = arith.constant dense<0xFF800000> : vector<16xf32>
    %234 = vector.multi_reduction <maximumf>, %233, %cst_79 [1] : vector<16x16xf32> to vector<16xf32>
    %235 = vector.shape_cast %234 : vector<16xf32> to vector<16x1xf32>
    %236 = vector.broadcast %235 : vector<16x1xf32> to vector<16x16xf32>
    %237 = arith.subf %233, %236 : vector<16x16xf32>
    %238 = math.exp %237 : vector<16x16xf32>
    %cst_80 = arith.constant dense<0.000000e+00> : vector<16xf32>
    %239 = vector.multi_reduction <add>, %238, %cst_80 [1] : vector<16x16xf32> to vector<16xf32>
    %240 = vector.shape_cast %239 : vector<16xf32> to vector<16x1xf32>
    %241 = tpu.reciprocal %240 {approx = true} : vector<16x1xf32> -> vector<16x1xf32>
    %242 = vector.broadcast %241 : vector<16x1xf32> to vector<16x16xf32>
    %243 = arith.mulf %238, %242 : vector<16x16xf32>
    %244 = vector.broadcast %31 : vector<1x128xf32> to vector<16x128xf32>
    %245 = arith.mulf %195, %244 : vector<16x128xf32>
    %cst_81 = arith.constant dense<0.000000e+00> : vector<16x128xf32>
    %246 = tpu.matmul %243, %245, %cst_81 {dimension_numbers = #tpu.dot_dimension_numbers<[1], [0], [0], [1], [0, 0, 1, 1], [], []>} : vector<16x16xf32>, vector<16x128xf32>, vector<16x128xf32> -> vector<16x128xf32>
    %247 = arith.addf %230, %246 : vector<16x128xf32>
    %248 = vector.broadcast %38 : vector<1x128xf32> to vector<16x128xf32>
    %249 = arith.mulf %194, %248 : vector<16x128xf32>
    %cst_82 = arith.constant dense<0.000000e+00> : vector<16x16xf32>
    %250 = tpu.matmul %189, %249, %cst_82 {dimension_numbers = #tpu.dot_dimension_numbers<[1], [1], [0], [0], [0, 0, 1, 0], [], []>} : vector<16x128xf32>, vector<16x128xf32>, vector<16x16xf32> -> vector<16x16xf32>
    %cst_83 = arith.constant dense<0xFF800000> : vector<16xf32>
    %251 = vector.multi_reduction <maximumf>, %250, %cst_83 [1] : vector<16x16xf32> to vector<16xf32>
    %252 = vector.shape_cast %251 : vector<16xf32> to vector<16x1xf32>
    %253 = vector.broadcast %252 : vector<16x1xf32> to vector<16x16xf32>
    %254 = arith.subf %250, %253 : vector<16x16xf32>
    %255 = math.exp %254 : vector<16x16xf32>
    %cst_84 = arith.constant dense<0.000000e+00> : vector<16xf32>
    %256 = vector.multi_reduction <add>, %255, %cst_84 [1] : vector<16x16xf32> to vector<16xf32>
    %257 = vector.shape_cast %256 : vector<16xf32> to vector<16x1xf32>
    %258 = tpu.reciprocal %257 {approx = true} : vector<16x1xf32> -> vector<16x1xf32>
    %259 = vector.broadcast %258 : vector<16x1xf32> to vector<16x16xf32>
    %260 = arith.mulf %255, %259 : vector<16x16xf32>
    %261 = vector.broadcast %38 : vector<1x128xf32> to vector<16x128xf32>
    %262 = arith.mulf %195, %261 : vector<16x128xf32>
    %cst_85 = arith.constant dense<0.000000e+00> : vector<16x128xf32>
    %263 = tpu.matmul %260, %262, %cst_85 {dimension_numbers = #tpu.dot_dimension_numbers<[1], [0], [0], [1], [0, 0, 1, 1], [], []>} : vector<16x16xf32>, vector<16x128xf32>, vector<16x128xf32> -> vector<16x128xf32>
    %264 = arith.addf %247, %263 : vector<16x128xf32>
    %c1_86 = arith.constant 1 : index
    %c0_87 = arith.constant 0 : index
    %c0_88 = arith.constant 0 : index
    %265 = vector.load %arg5[%c1_86, %c0_87, %c0_88] : memref<2x128x32xf32, #tpu.memory_space<vmem>>, vector<1x128x32xf32>
    %266 = vector.shape_cast %265 : vector<1x128x32xf32> to vector<128x32xf32>
    %cst_89 = arith.constant dense<0.000000e+00> : vector<16x32xf32>
    %267 = tpu.matmul %264, %266, %cst_89 {dimension_numbers = #tpu.dot_dimension_numbers<[1], [0], [0], [1], [0, 0, 1, 1], [], []>} : vector<16x128xf32>, vector<128x32xf32>, vector<16x32xf32> -> vector<16x32xf32>
    %268 = arith.addf %181, %267 : vector<16x32xf32>
    %c1_90 = arith.constant 1 : index
    %c0_91 = arith.constant 0 : index
    %c0_92 = arith.constant 0 : index
    %269 = vector.load %arg6[%c1_90, %c0_91, %c0_92] : memref<2x1x32xf32, #tpu.memory_space<vmem>>, vector<1x1x32xf32>
    %270 = vector.shape_cast %269 : vector<1x1x32xf32> to vector<1x32xf32>
    %271 = vector.broadcast %270 : vector<1x32xf32> to vector<16x32xf32>
    %272 = arith.addf %268, %271 : vector<16x32xf32>
    %cst_93 = arith.constant dense<0.000000e+00> : vector<16xf32>
    %273 = vector.multi_reduction <add>, %272, %cst_93 [1] : vector<16x32xf32> to vector<16xf32>
    %274 = vector.shape_cast %273 : vector<16xf32> to vector<16x1xf32>
    %cst_94 = arith.constant 3.200000e+01 : f32
    %275 = vector.broadcast %cst_94 : f32 to vector<16x1xf32>
    %276 = arith.divf %274, %275 : vector<16x1xf32>
    %277 = vector.broadcast %276 : vector<16x1xf32> to vector<16x32xf32>
    %278 = arith.subf %272, %277 : vector<16x32xf32>
    %279 = arith.mulf %278, %278 : vector<16x32xf32>
    %cst_95 = arith.constant dense<0.000000e+00> : vector<16xf32>
    %280 = vector.multi_reduction <add>, %279, %cst_95 [1] : vector<16x32xf32> to vector<16xf32>
    %281 = vector.shape_cast %280 : vector<16xf32> to vector<16x1xf32>
    %cst_96 = arith.constant 3.200000e+01 : f32
    %282 = vector.broadcast %cst_96 : f32 to vector<16x1xf32>
    %283 = arith.divf %281, %282 : vector<16x1xf32>
    %cst_97 = arith.constant 9.99999974E-6 : f32
    %284 = vector.broadcast %cst_97 : f32 to vector<16x1xf32>
    %285 = arith.addf %283, %284 : vector<16x1xf32>
    %286 = math.rsqrt %285 : vector<16x1xf32>
    %287 = vector.broadcast %286 : vector<16x1xf32> to vector<16x32xf32>
    %288 = arith.mulf %278, %287 : vector<16x32xf32>
    %c1_98 = arith.constant 1 : index
    %c0_99 = arith.constant 0 : index
    %c0_100 = arith.constant 0 : index
    %289 = vector.load %arg7[%c1_98, %c0_99, %c0_100] : memref<2x1x32xf32, #tpu.memory_space<vmem>>, vector<1x1x32xf32>
    %290 = vector.shape_cast %289 : vector<1x1x32xf32> to vector<1x32xf32>
    %291 = vector.broadcast %290 : vector<1x32xf32> to vector<16x32xf32>
    %292 = arith.mulf %288, %291 : vector<16x32xf32>
    %c1_101 = arith.constant 1 : index
    %c0_102 = arith.constant 0 : index
    %c0_103 = arith.constant 0 : index
    %293 = vector.load %arg8[%c1_101, %c0_102, %c0_103] : memref<2x1x32xf32, #tpu.memory_space<vmem>>, vector<1x1x32xf32>
    %294 = vector.shape_cast %293 : vector<1x1x32xf32> to vector<1x32xf32>
    %295 = vector.broadcast %294 : vector<1x32xf32> to vector<16x32xf32>
    %296 = arith.addf %292, %295 : vector<16x32xf32>
    %c1_104 = arith.constant 1 : index
    %c0_105 = arith.constant 0 : index
    %c0_106 = arith.constant 0 : index
    %297 = vector.load %arg9[%c1_104, %c0_105, %c0_106] : memref<2x32x128xf32, #tpu.memory_space<vmem>>, vector<1x32x128xf32>
    %298 = vector.shape_cast %297 : vector<1x32x128xf32> to vector<32x128xf32>
    %cst_107 = arith.constant dense<0.000000e+00> : vector<16x128xf32>
    %299 = tpu.matmul %296, %298, %cst_107 {dimension_numbers = #tpu.dot_dimension_numbers<[1], [0], [0], [1], [0, 0, 1, 1], [], []>} : vector<16x32xf32>, vector<32x128xf32>, vector<16x128xf32> -> vector<16x128xf32>
    %c1_108 = arith.constant 1 : index
    %c0_109 = arith.constant 0 : index
    %c0_110 = arith.constant 0 : index
    %300 = vector.load %arg10[%c1_108, %c0_109, %c0_110] : memref<2x1x128xf32, #tpu.memory_space<vmem>>, vector<1x1x128xf32>
    %301 = vector.shape_cast %300 : vector<1x1x128xf32> to vector<1x128xf32>
    %302 = vector.broadcast %301 : vector<1x128xf32> to vector<16x128xf32>
    %303 = arith.addf %299, %302 : vector<16x128xf32>
    %cst_111 = arith.constant 5.000000e-01 : f32
    %304 = vector.broadcast %cst_111 : f32 to vector<16x128xf32>
    %305 = arith.mulf %304, %303 : vector<16x128xf32>
    %cst_112 = arith.constant 4.471500e-02 : f32
    %306 = vector.broadcast %cst_112 : f32 to vector<16x128xf32>
    %307 = arith.mulf %306, %303 : vector<16x128xf32>
    %308 = arith.mulf %307, %303 : vector<16x128xf32>
    %309 = arith.mulf %308, %303 : vector<16x128xf32>
    %310 = arith.addf %303, %309 : vector<16x128xf32>
    %cst_113 = arith.constant 0.797884583 : f32
    %311 = vector.broadcast %cst_113 : f32 to vector<16x128xf32>
    %312 = arith.mulf %311, %310 : vector<16x128xf32>
    %313 = math.tanh %312 : vector<16x128xf32>
    %cst_114 = arith.constant 1.000000e+00 : f32
    %314 = vector.broadcast %cst_114 : f32 to vector<16x128xf32>
    %315 = arith.addf %314, %313 : vector<16x128xf32>
    %316 = arith.mulf %305, %315 : vector<16x128xf32>
    %c1_115 = arith.constant 1 : index
    %c0_116 = arith.constant 0 : index
    %c0_117 = arith.constant 0 : index
    %317 = vector.load %arg11[%c1_115, %c0_116, %c0_117] : memref<2x128x32xf32, #tpu.memory_space<vmem>>, vector<1x128x32xf32>
    %318 = vector.shape_cast %317 : vector<1x128x32xf32> to vector<128x32xf32>
    %cst_118 = arith.constant dense<0.000000e+00> : vector<16x32xf32>
    %319 = tpu.matmul %316, %318, %cst_118 {dimension_numbers = #tpu.dot_dimension_numbers<[1], [0], [0], [1], [0, 0, 1, 1], [], []>} : vector<16x128xf32>, vector<128x32xf32>, vector<16x32xf32> -> vector<16x32xf32>
    %320 = arith.addf %272, %319 : vector<16x32xf32>
    %c1_119 = arith.constant 1 : index
    %c0_120 = arith.constant 0 : index
    %c0_121 = arith.constant 0 : index
    %321 = vector.load %arg12[%c1_119, %c0_120, %c0_121] : memref<2x1x32xf32, #tpu.memory_space<vmem>>, vector<1x1x32xf32>
    %322 = vector.shape_cast %321 : vector<1x1x32xf32> to vector<1x32xf32>
    %323 = vector.broadcast %322 : vector<1x32xf32> to vector<16x32xf32>
    %324 = arith.addf %320, %323 : vector<16x32xf32>
    %325 = tpu.iota {dimensions = array<i32: 0>} : vector<32x32xi32>
    %326 = tpu.iota {dimensions = array<i32: 1>} : vector<32x32xi32>
    %327 = arith.cmpi eq, %325, %326 : vector<32x32xi32>
    %328 = arith.extui %327 : vector<32x32xi1> to vector<32x32xi32>
    %329 = arith.sitofp %328 : vector<32x32xi32> to vector<32x32xf32>
    %cst_122 = arith.constant dense<0.000000e+00> : vector<32x16xf32>
    %330 = tpu.matmul %329, %324, %cst_122 {dimension_numbers = #tpu.dot_dimension_numbers<[1], [1], [0], [0], [0, 0, 1, 0], [], []>} : vector<32x32xf32>, vector<16x32xf32>, vector<32x16xf32> -> vector<32x16xf32>
    %c0_123 = arith.constant 0 : index
    %c0_124 = arith.constant 0 : index
    %c0_125 = arith.constant 0 : index
    %331 = vector.load %arg13[%c0_123, %c0_124, %c0_125] : memref<1x32x16xf32, #tpu.memory_space<vmem>>, vector<1x32x16xf32>
    %332 = vector.shape_cast %331 : vector<1x32x16xf32> to vector<32x16xf32>
    %333 = vector.shape_cast %330 : vector<32x16xf32> to vector<1x32x16xf32>
    tpu.vector_store %arg13[%c0_123, %c0_124, %c0_125], %333 {strides = array<i32>} : memref<1x32x16xf32, #tpu.memory_space<vmem>>, vector<1x32x16xf32>,
    return
  }
  func.func @transform_0(%arg0: i32) -> (i32, i32, i32) {
    %c0_i32 = arith.constant 0 : i32
    %c0_i32_0 = arith.constant 0 : i32
    %c0_i32_1 = arith.constant 0 : i32
    return %arg0, %c0_i32, %c0_i32_0 : i32, i32, i32
  }
  func.func @transform_1(%arg0: i32) -> (i32, i32, i32) {
    %c0_i32 = arith.constant 0 : i32
    %c0_i32_0 = arith.constant 0 : i32
    %c0_i32_1 = arith.constant 0 : i32
    %c0_i32_2 = arith.constant 0 : i32
    return %c0_i32, %c0_i32_0, %c0_i32_1 : i32, i32, i32
  }
  func.func @transform_2(%arg0: i32) -> (i32, i32) {
    %c0_i32 = arith.constant 0 : i32
    %c0_i32_0 = arith.constant 0 : i32
    %c0_i32_1 = arith.constant 0 : i32
    return %c0_i32, %c0_i32_0 : i32, i32
  }
  func.func @transform_3(%arg0: i32) -> (i32, i32) {
    %c0_i32 = arith.constant 0 : i32
    %c0_i32_0 = arith.constant 0 : i32
    %c0_i32_1 = arith.constant 0 : i32
    return %c0_i32, %c0_i32_0 : i32, i32
  }
  func.func @transform_4(%arg0: i32) -> (i32, i32, i32) {
    %c0_i32 = arith.constant 0 : i32
    %c0_i32_0 = arith.constant 0 : i32
    %c0_i32_1 = arith.constant 0 : i32
    %c0_i32_2 = arith.constant 0 : i32
    return %c0_i32, %c0_i32_0, %c0_i32_1 : i32, i32, i32
  }
  func.func @transform_5(%arg0: i32) -> (i32, i32, i32) {
    %c0_i32 = arith.constant 0 : i32
    %c0_i32_0 = arith.constant 0 : i32
    %c0_i32_1 = arith.constant 0 : i32
    %c0_i32_2 = arith.constant 0 : i32
    return %c0_i32, %c0_i32_0, %c0_i32_1 : i32, i32, i32
  }
  func.func @transform_6(%arg0: i32) -> (i32, i32, i32) {
    %c0_i32 = arith.constant 0 : i32
    %c0_i32_0 = arith.constant 0 : i32
    %c0_i32_1 = arith.constant 0 : i32
    %c0_i32_2 = arith.constant 0 : i32
    return %c0_i32, %c0_i32_0, %c0_i32_1 : i32, i32, i32
  }
  func.func @transform_7(%arg0: i32) -> (i32, i32, i32) {
    %c0_i32 = arith.constant 0 : i32
    %c0_i32_0 = arith.constant 0 : i32
    %c0_i32_1 = arith.constant 0 : i32
    %c0_i32_2 = arith.constant 0 : i32
    return %c0_i32, %c0_i32_0, %c0_i32_1 : i32, i32, i32
  }
  func.func @transform_8(%arg0: i32) -> (i32, i32, i32) {
    %c0_i32 = arith.constant 0 : i32
    %c0_i32_0 = arith.constant 0 : i32
    %c0_i32_1 = arith.constant 0 : i32
    %c0_i32_2 = arith.constant 0 : i32
    return %c0_i32, %c0_i32_0, %c0_i32_1 : i32, i32, i32
  }
  func.func @transform_9(%arg0: i32) -> (i32, i32, i32) {
    %c0_i32 = arith.constant 0 : i32
    %c0_i32_0 = arith.constant 0 : i32
    %c0_i32_1 = arith.constant 0 : i32
    %c0_i32_2 = arith.constant 0 : i32
    return %c0_i32, %c0_i32_0, %c0_i32_1 : i32, i32, i32
  }
  func.func @transform_10(%arg0: i32) -> (i32, i32, i32) {
    %c0_i32 = arith.constant 0 : i32
    %c0_i32_0 = arith.constant 0 : i32
    %c0_i32_1 = arith.constant 0 : i32
    %c0_i32_2 = arith.constant 0 : i32
    return %c0_i32, %c0_i32_0, %c0_i32_1 : i32, i32, i32
  }
  func.func @transform_11(%arg0: i32) -> (i32, i32, i32) {
    %c0_i32 = arith.constant 0 : i32
    %c0_i32_0 = arith.constant 0 : i32
    %c0_i32_1 = arith.constant 0 : i32
    %c0_i32_2 = arith.constant 0 : i32
    return %c0_i32, %c0_i32_0, %c0_i32_1 : i32, i32, i32
  }
  func.func @transform_12(%arg0: i32) -> (i32, i32, i32) {
    %c0_i32 = arith.constant 0 : i32
    %c0_i32_0 = arith.constant 0 : i32
    %c0_i32_1 = arith.constant 0 : i32
    return %arg0, %c0_i32, %c0_i32_0 : i32, i32, i32
  }
}

</mosaic_0001>

<bundles_post_ra>
// kernel: tile.14
= control target key start
LH: loop header
LB: loop body
LE: loop exit
PB: predicated region body
PF: predicated region fallthrough
CT: control target
= control target key end

     0   :  { %vm82_vm0 = vcmask 1047556   ;;  %vm84_vm1 = vcmask 261120   ;;  %s195_s9 = smov 96   ;;  %s196_s14 = smov 32   ;;  %vm103_vm2 = vcmask 1048320   ;;  %vm124_vm3 = vcmask 785920   ;;  %s289_s0 = inlined_call_operand.vmem [shape: f32[16,4,32], index: 0, kind: input, shape index: {}]   ;;  %s290_s1 = inlined_call_operand.vmem [shape: f32[16,128], index: 1, kind: output, shape index: {}]  }
   0x1   :  { %v180_v0 = vld [vmem:[%s289_s0 + $0x1c] sm:$0xf]  ;;  %v181_v1 = vld [vmem:[%s289_s0 + $0x18] sm:$0xf]  ;;  %v182_v2 = vld [vmem:[%s289_s0 + $0x14] sm:$0xf] }
   0x2   :  { %48 = vst [vmem:[#allocation0 + $0x38] sm:$0xf] %v180_v0  ;;  %53 = vst [vmem:[#allocation0 + $0x30] sm:$0xf] %v181_v1  ;;  %v183_v3 = vld [vmem:[%s289_s0 + $0x10] sm:$0xf] }
   0x3   :  { %58 = vst [vmem:[#allocation0 + $0x28] sm:$0xf] %v182_v2  ;;  %v184_v4 = vld [vmem:[%s289_s0 + $0xc] sm:$0xf]  ;;  %v185_v5 = vld [vmem:[%s289_s0 + $0x8] sm:$0xf] }
   0x4   :  { %63 = vst [vmem:[#allocation0 + $0x20] sm:$0xf] %v183_v3  ;;  %68 = vst [vmem:[#allocation0 + $0x18] sm:$0xf] %v184_v4  ;;  %v186_v6 = vld [vmem:[%s289_s0 + $0x4] sm:$0xf] }
   0x5   :  { %73 = vst [vmem:[#allocation0 + $0x10] sm:$0xf] %v185_v5  ;;  %v78_v7 = vld [vmem:[%s289_s0] sm:$0xf]  ;;  %77 = vst [vmem:[#allocation0 + $0x8] sm:$0xf] %v186_v6 }
   0x6   :  { %79 = vst [vmem:[#allocation0] sm:$0xf] %v78_v7  ;;  %v172_v8 = vld [vmem:[%s289_s0 + $0x3c] sm:$0xf]  ;;  %v173_v9 = vld [vmem:[%s289_s0 + $0x38] sm:$0xf] }
   0x7   :  { %8 = vst [vmem:[#allocation0 + $0x78] sm:$0xf] %v172_v8  ;;  %13 = vst [vmem:[#allocation0 + $0x70] sm:$0xf] %v173_v9  ;;  %v174_v10 = vld [vmem:[%s289_s0 + $0x34] sm:$0xf] }
   0x8   :  { %v175_v11 = vld [vmem:[%s289_s0 + $0x30] sm:$0xf]  ;;  %v176_v12 = vld [vmem:[%s289_s0 + $0x2c] sm:$0xf]  ;;  %18 = vst [vmem:[#allocation0 + $0x68] sm:$0xf] %v174_v10 }
   0x9   :  { %23 = vst [vmem:[#allocation0 + $0x60] sm:$0xf] %v175_v11  ;;  %28 = vst [vmem:[#allocation0 + $0x58] sm:$0xf] %v176_v12  ;;  %v177_v13 = vld [vmem:[%s289_s0 + $0x28] sm:$0xf] }
   0xa   :  { %v178_v14 = vld [vmem:[%s289_s0 + $0x24] sm:$0xf]  ;;  %v179_v15 = vld [vmem:[%s289_s0 + $0x20] sm:$0xf]  ;;  %33 = vst [vmem:[#allocation0 + $0x50] sm:$0xf] %v177_v13 }
   0xb   :  { %38 = vst [vmem:[#allocation0 + $0x48] sm:$0xf] %v178_v14  ;;  %43 = vst [vmem:[#allocation0 + $0x40] sm:$0xf] %v179_v15  ;;  %s194_s0 = smov 64   ;;  %vm145_vm4 = vcmask 523520  }
   0xc   :  { %v119_v16 = vld [vmem:[#allocation0 + $0x2] ss:$8 sm:$0xf0]   ;;  %v98_v17 = vld [vmem:[#allocation0 + $0x3] ss:$8 sm:$0xf0]  }
   0xd   :  { %v117_v18 = vld [vmem:[#allocation0 + $0x2] ss:$8 sm:$0xf]   ;;  %v96_v19 = vld [vmem:[#allocation0 + $0x3] ss:$8 sm:$0xf]  }
   0xe   :  { %v121_v20 = vsel %vm82_vm0, %v119_v16, %v117_v18  ;;  %v100_v21 = vsel %vm82_vm0, %v98_v17, %v96_v19  ;;  %v138_v24 = vld [vmem:[#allocation0 + $0x1] ss:$8 sm:$0xf]   ;;  %v80_v32 = vld [vmem:[#allocation0] ss:$8 sm:$0xf]  }
   0xf   :  { %122 = vrot.lane.b32.xlu1 %v121_v20, %s194_s0  ;;  %101 = vrot.lane.b32.xlu0 %v100_v21, %s195_s9  ;;  %v140_v25 = vld [vmem:[#allocation0 + $0x1] ss:$8 sm:$0xf0]   ;;  %v81_v33 = vld [vmem:[#allocation0] ss:$8 sm:$0xf0]  }
  0x10   :  { %v129_v22 = vld [vmem:[#allocation0 + $0x42] ss:$8 sm:$0xf0]   ;;  %v108_v23 = vld [vmem:[#allocation0 + $0x43] ss:$8 sm:$0xf0]   ;;  %v83_v34 = vsel %vm82_vm0, %v81_v33, %v80_v32  ;;  %v142_v38 = vsel %vm82_vm0, %v140_v25, %v138_v24 }
  0x11   :  { %v150_v31 = vld [vmem:[#allocation0 + $0x41] ss:$8 sm:$0xf0]   ;;  %v89_v36 = vld [vmem:[#allocation0 + $0x40] ss:$8 sm:$0xf0]  }
  0x12   :  { %v127_v26 = vld [vmem:[#allocation0 + $0x42] ss:$8 sm:$0xf]   ;;  %v106_v27 = vld [vmem:[#allocation0 + $0x43] ss:$8 sm:$0xf]  }
  0x13   :  { %v131_v28 = vsel %vm82_vm0, %v129_v22, %v127_v26  ;;  %v110_v29 = vsel %vm82_vm0, %v108_v23, %v106_v27  ;;  %v148_v30 = vld [vmem:[#allocation0 + $0x41] ss:$8 sm:$0xf]   ;;  %v87_v35 = vld [vmem:[#allocation0 + $0x40] ss:$8 sm:$0xf]  }
  0x14   :  { %132 = vrot.lane.b32.xlu1 %v131_v28, %s194_s0  ;;  %111 = vrot.lane.b32.xlu0 %v110_v29, %s195_s9  ;;  %v152_v37 = vsel %vm82_vm0, %v150_v31, %v148_v30  ;;  %85 = vst.msk [vmem:[%s290_s1] sm:$0xff] %vm84_vm1, %v83_v34   ;;  %v91_v39 = vsel %vm82_vm0, %v89_v36, %v87_v35 }
  0x15   :  { %187 = vst.msk [vmem:[%s290_s1 + $0x8] sm:$0xff] %vm84_vm1, %v91_v39  }
  0x18   :  { %153 = vrot.lane.b32.xlu1 %v152_v37, %s196_s14  ;;  %143 = vrot.lane.b32.xlu0 %v142_v38, %s196_s14 }
  0x81   :  { %v123_v40 = vpop.permute.xlu1 %122   ;;  %v102_v41 = vpop.permute.xlu0 %101  }
  0x82   :  { %104 = vst.msk [vmem:[%s290_s1] sm:$0xff] %vm103_vm2, %v102_v41  }
  0x83   :  { %125 = vst.msk [vmem:[%s290_s1] sm:$0xff] %vm124_vm3, %v123_v40  }
  0x86   :  { %v133_v42 = vpop.permute.xlu1 %132   ;;  %v112_v43 = vpop.permute.xlu0 %111  }
  0x87   :  { %188 = vst.msk [vmem:[%s290_s1 + $0x8] sm:$0xff] %vm103_vm2, %v112_v43  }
  0x88   :  { %189 = vst.msk [vmem:[%s290_s1 + $0x8] sm:$0xff] %vm124_vm3, %v133_v42  }
  0x8a   :  { %v154_v44 = vpop.permute.xlu1 %153   ;;  %v144_v45 = vpop.permute.xlu0 %143  }
  0x8b   :  { %190 = vst.msk [vmem:[%s290_s1 + $0x8] sm:$0xff] %vm145_vm4, %v154_v44   ;;  %146 = vst.msk [vmem:[%s290_s1] sm:$0xff] %vm145_vm4, %v144_v45  }

// kernel: transformer1d_forward.1
= control target key start
LH: loop header
LB: loop body
LE: loop exit
PB: predicated region body
PF: predicated region fallthrough
CT: control target
= control target key end

     0   :  { %s4514_s21 = smov 0   ;;  %s5220_s0 = inlined_call_operand.vmem [shape: f32[2,32,16], index: 0, kind: input, shape index: {}]   ;;  %s5221_s1 = inlined_call_operand.vmem [shape: f32[2,32,640], index: 1, kind: input, shape index: {}]   ;;  %s5222_s2 = inlined_call_operand.vmem [shape: f32[16,128], index: 2, kind: input, shape index: {}]   ;;  %s5223_s3 = inlined_call_operand.vmem [shape: f32[16,128], index: 3, kind: input, shape index: {}]   ;;  %s5224_s4 = inlined_call_operand.vmem [shape: f32[2,128,32], index: 4, kind: input, shape index: {}]   ;;  %s5225_s5 = inlined_call_operand.vmem [shape: f32[2,1,32], index: 5, kind: input, shape index: {}]   ;;  %s5226_s6 = inlined_call_operand.vmem [shape: f32[2,1,32], index: 6, kind: input, shape index: {}]   ;;  %s5227_s7 = inlined_call_operand.vmem [shape: f32[2,1,32], index: 7, kind: input, shape index: {}]   ;;  %s5228_s8 = inlined_call_operand.vmem [shape: f32[2,32,128], index: 8, kind: input, shape index: {}]   ;;  %s5229_s9 = inlined_call_operand.vmem [shape: f32[2,1,128], index: 9, kind: input, shape index: {}]   ;;  %s5230_s10 = inlined_call_operand.vmem [shape: f32[2,128,32], index: 10, kind: input, shape index: {}]   ;;  %s5231_s11 = inlined_call_operand.vmem [shape: f32[2,1,32], index: 11, kind: input, shape index: {}]   ;;  %s5232_s12 = inlined_call_operand.vmem [shape: f32[2,32,16], index: 12, kind: output, shape index: {}]  }
   0x1 LB: > { %s3440_s22 = sadd.s32 4294967295, %s4446_s21   ;;  %p3444_p0 = scmp.ge.s32.totalorder %s4446_s21, 1  ;;  %s4446_s21 = sphi %s4514_s21, %s22_s21  }
   0x2   : > { %p362_p1 = scmp.lt.s32.totalorder %s4446_s21, 3 }
   0x4   : > { %p363_p2 = pnand %p3444_p0, %p362_p1 }
   0x5   : > { %p404_p3 = scmp.lt.s32.totalorder (!%p363_p2), %s3440_s22, 1  ;;  %v418_v0 = vlaneseq (!%p363_p2)  ;;  %v548_v1 = vld [vmem:[%s5221_s1 + $0x8] sm:$0xff] (!%p363_p2)  ;;  %v553_v2 = vld [vmem:[%s5221_s1 + $0x30] sm:$0xff] (!%p363_p2)  ;;  %v547_v3 = vld [vmem:[%s5221_s1] sm:$0xff] (!%p363_p2)  ;;  %v4448_v6 = vmov (!%p363_p2), 0.0   ;;  %vm429_vm0 = vcmask (!%p363_p2), 130048  }
   0x6   : > { %366 = sbr.rel (%p363_p2) target bundleno = 5531 (0x159b), region = 68  ;;  %v4077_v4 = vpack.c.bf16 (!%p363_p2), %v553_v2, %v548_v1  ;;  %v552_v5 = vld [vmem:[%s5221_s1 + $0x28] sm:$0xff] (!%p363_p2)  ;;  %638 = vmatprep.mubr.f32.mxu1 (!%p363_p2), %v4448_v6  ;;  %v558_v10 = vld [vmem:[%s5221_s1 + $0x58] sm:$0xff] (!%p363_p2)  ;;  %v563_v11 = vld [vmem:[%s5221_s1 + $0x80] sm:$0xff] (!%p363_p2)  ;;  %vm567_vm4 = vcmask (!%p363_p2), 261120  }
   0x7   : > { %v4537_v7 = vshrl.u32 (!%p363_p2), %v418_v0, 7  ;;  %v4539_v8 = vand.u32 (!%p363_p2), 127, %v418_v0  ;;  %v4079_v9 = vpack.c.bf16 (!%p363_p2), %v552_v5, %v547_v3  ;;  %v4081_v12 = vpack.c.bf16 (!%p363_p2), %v563_v11, %v558_v10  ;;  %v557_v13 = vld [vmem:[%s5221_s1 + $0x50] sm:$0xff] (!%p363_p2)  ;;  %v562_v14 = vld [vmem:[%s5221_s1 + $0x78] sm:$0xff] (!%p363_p2)  ;;  %vm4563_vm2 = vmpackc.low (!%p363_p2), %vm429_vm0, %vm429_vm0 }
   0x8   : > { %4078 = vmatprep.subr.bf16.mxu1 (!%p363_p2), %v4077_v4  ;;  %v4083_v15 = vpack.c.bf16 (!%p363_p2), %v562_v14, %v557_v13  ;;  %v551_v24 = vld [vmem:[%s5221_s1 + $0x20] sm:$0xff] (!%p363_p2)  ;;  %v556_v25 = vld [vmem:[%s5221_s1 + $0x48] sm:$0xff] (!%p363_p2)  ;;  %v561_v28 = vld [vmem:[%s5221_s1 + $0x70] sm:$0xff] (!%p363_p2) }
   0x9   : > { %vm423_vm1 = vcmp.eq.s32.totalorder (!%p363_p2), %v4537_v7, %v4539_v8  ;;  %4080 = vmatpush1.bf16.msra.mxu1 (!%p363_p2), %v4079_v9  ;;  %v420_v26 = vadd.s32 (!%p363_p2), 8, %v4537_v7  ;;  %v4093_v27 = vpack.c.bf16 (!%p363_p2), %v556_v25, %v551_v24  ;;  %v566_v29 = vld [vmem:[%s5221_s1 + $0x98] sm:$0xff] (!%p363_p2)  ;;  %v555_v33 = vld [vmem:[%s5221_s1 + $0x40] sm:$0xff] (!%p363_p2)  ;;  %v549_v35 = vld [vmem:[%s5221_s1 + $0x10] sm:$0xff] (!%p363_p2)  ;;  %vm532_vm5 = vcmp.ge.s32.totalorder (!%p363_p2), %v4539_v8, 32 }
   0xa   : > { %v4568_v17 = vsel (!%p363_p2), %vm423_vm1, 1.0, %v4448_v6  ;;  %4082 = vmatprep.subr.bf16.mxu1 (!%p363_p2), %v4081_v12  ;;  %v4097_v31 = vpack.c.bf16 (!%p363_p2), %v566_v29, %v561_v28  ;;  %v550_v32 = vld [vmem:[%s5221_s1 + $0x18] sm:$0xff] (!%p363_p2)  ;;  %v560_v37 = vld [vmem:[%s5221_s1 + $0x68] sm:$0xff] (!%p363_p2)  ;;  %v565_v38 = vld [vmem:[%s5221_s1 + $0x90] sm:$0xff] (!%p363_p2)  ;;  %vm533_vm6 = vcmp.lt.s32.totalorder (!%p363_p2), %v4539_v8, 64  ;;  %vm537_vm7 = vcmp.ge.s32.totalorder (!%p363_p2), %v4539_v8, 64 }
   0xb   : > { %3756 = vmatprep.mubr.msk.f32.mxu0 (!%p363_p2), %vm429_vm0, %v4568_v17  ;;  %vm424_vm3 = vcmp.eq.s32.totalorder (!%p363_p2), %v420_v26, %v4539_v8  ;;  %v4085_v34 = vpack.c.bf16 (!%p363_p2), %v555_v33, %v550_v32  ;;  %v554_v36 = vld [vmem:[%s5221_s1 + $0x38] sm:$0xff] (!%p363_p2)  ;;  %v4089_v41 = vpack.c.bf16 (!%p363_p2), %v565_v38, %v560_v37  ;;  %v559_v42 = vld [vmem:[%s5221_s1 + $0x60] sm:$0xff] (!%p363_p2)  ;;  %v564_v43 = vld [vmem:[%s5221_s1 + $0x88] sm:$0xff] (!%p363_p2)  ;;  %vm538_vm8 = vcmp.lt.s32.totalorder (!%p363_p2), %v4539_v8, 96 }
   0xc   : > { %v4595_v30 = vsel (!%p363_p2), %vm424_vm3, 1.0, %v4448_v6  ;;  %v4087_v39 = vpack.c.bf16 (!%p363_p2), %v554_v36, %v549_v35  ;;  %v4091_v45 = vpack.c.bf16 (!%p363_p2), %v564_v43, %v559_v42  ;;  %vm534_vm9 = vmand (!%p363_p2), %vm532_vm5, %vm533_vm6  ;;  %vm528_vm10 = vcmp.lt.s32.totalorder (!%p363_p2), %v4539_v8, 32  ;;  %v4651_v46 = vld [vmem:[%s5222_s2] sm:$0xff] (!%p363_p2)  ;;  %v4678_v61 = vld [vmem:[%s5222_s2 + $0x8] sm:$0xff] (!%p363_p2) }
   0xd   : > { %s5236_s22 = smov (!%p404_p3, %s3440_s22), 1  ;;  %4084 = vmatpush1.bf16.msra.mxu1 %v4083_v15  ;;  %vm539_vm11 = vmand %vm537_vm7, %vm538_vm8  ;;  %vm542_vm12 = vcmp.ge.s32.totalorder %v4539_v8, 96  ;;  %v4656_v47 = vld [vmem:[%s5223_s3] sm:$0xff]  ;;  %v4659_v48 = vsel %vm528_vm10, 1.0, %v4448_v6  ;;  %v4662_v49 = vsel %vm534_vm9, 1.0, %v4448_v6  ;;  %v4687_v2 = vld [vmem:[%s5223_s3 + $0x8] sm:$0xff] }
   0xe   : > { %s3574_s23 = sshll.u32 %s5236_s22, 5  ;;  %4086 = vmatprep.subr.bf16.mxu1 %v4085_v34  ;;  %v4665_v50 = vsel %vm539_vm11, 1.0, %v4448_v6  ;;  %v4668_v52 = vsel %vm542_vm12, 1.0, %v4448_v6  ;;  %vm4334_vm13 = vmpackc.low %vm567_vm4, %vm567_vm4 }
   0xf   : > { %s408_s26 = scalar_lea.vmem %s5220_s0, %s3574_s23  ;;  %s413_s25 = scalar_lea.vmem %s5232_s12, %s3574_s23 }
  0x10   : > { %v414_v18 = vld [vmem:[%s408_s26] sm:$0xff]  ;;  %v415_v19 = vld [vmem:[%s408_s26 + $0x8] sm:$0xff]  ;;  %v416_v20 = vld [vmem:[%s408_s26 + $0x10] sm:$0xff] }
  0x11   : > { %v4065_v21 = vpack.c.bf16 %v415_v19, %v414_v18  ;;  %v417_v22 = vld [vmem:[%s408_s26 + $0x18] sm:$0xff] }
  0x12   : > { %v4071_v23 = vpack.c.bf16 %v417_v22, %v416_v20 }
  0x13   : > { %4067 = vmatprep.subr.msk.bf16.mxu0 %vm4563_vm2, %v4065_v21 }
  0x14   : > { %4070 = vmatpush3.bf16.xpose.msk.msra.mxu0 %vm4563_vm2, %v4065_v21 }
  0x15   : > { %4073 = vmatprep.subr.msk.bf16.mxu0 %vm4563_vm2, %v4071_v23 }
  0x1c   : > { %4076 = vmatpush3.bf16.xpose.msk.msra.mxu0 %vm4563_vm2, %v4071_v23 }
  0x1d   : > { %4094 = vmatprep.subr.bf16.mxu0 %v4093_v27 }
  0x23   : > { %3757 = vmatmul.mubr.msk.f32.vlgmr.msra.gmra.mrb[0].mxu0 %vm429_vm0, %v4595_v30 }
  0x24   : > { %4096 = vmatpush3.bf16.msra.mxu0 %v4093_v27 }
  0x25   : > { %4098 = vmatprep.subr.bf16.mxu0 %v4097_v31 }
  0x28   : > { %4100 = vmatpush3.bf16.msra.mxu0 %v4097_v31 }
  0xf6   : > { %v4617_v40 = vpop.f32.mrb[0].mxu0 }
  0xf7   : > { %v4625_v44 = vpop.f32.mrb[1].mxu0 }
  0xf8   : > { %3461 = vmatmul.mubr.msk.f32.vlgmr.msra.gmra.mrb[0].mxu1 %vm567_vm4, %v4625_v44  ;;  %3767 = vmatprep.mubr.msk.f32.mxu0 %vm567_vm4, %v4625_v44 }
  0xf9   : > { %4088 = vmatpush1.bf16.msra.mxu1 %v4087_v39  ;;  %3768 = vmatmul.mubr.msk.f32.vlgmr.msra.gmra.mrb[2].mxu0 %vm567_vm4, %v4617_v40 }
  0xfa   : > { %644 = vmatprep.mubr.f32.mxu1 %v4448_v6  ;;  %4090 = vmatprep.subr.bf16.mxu1 %v4089_v41 }
  0xfc   : > { %3462 = vmatmul.mubr.msk.f32.gmra.mrb[2].mxu1 %vm567_vm4, %v4617_v40 }
  0xfd   : > { %4092 = vmatpush1.bf16.msra.mxu1 %v4091_v45  ;;  %715 = vmatprep.mubr.f32.mxu1 %v4448_v6 }
 0x100   : > { %3463 = vmatmul.mubr.msk.f32.vlgmr.msra.gmra.mrb[4].mxu1 %vm567_vm4, %v4625_v44 }
 0x101   : > { %721 = vmatprep.mubr.f32.mxu1 %v4448_v6 }
 0x104   : > { %3464 = vmatmul.mubr.msk.f32.gmra.mrb[6].mxu1 %vm567_vm4, %v4617_v40 }
 0x1cb   : > { %v640_v51 = vpop.f32.mrb[0].mxu1 }
 0x1cc   : > { %v803_v53 = vmul.f32 %v640_v51, %v4651_v46  ;;  %v642_v54 = vpop.f32.mrb[1].mxu1  ;;  %v3769_v55 = vpop.f32.mrb[2].mxu0 }
 0x1cd   : > { %v805_v56 = vmul.f32 %v642_v54, %v4656_v47  ;;  %v915_v57 = vmul.f32 %v3769_v55, %v4659_v48  ;;  %v1016_v58 = vmul.f32 %v3769_v55, %v4662_v49  ;;  %v1279_v59 = vmul.f32 %v3769_v55, %v4665_v50  ;;  %v794_v60 = vpop.f32.mrb[3].mxu0 }
 0x1ce   : > { %v1463_v62 = vmul.f32 %v3769_v55, %v4668_v52  ;;  %v914_v63 = vmul.f32 %v4659_v48, %v794_v60  ;;  %v1015_v0 = vmul.f32 %v4662_v49, %v794_v60  ;;  %v1278_v1 = vmul.f32 %v4665_v50, %v794_v60 }
 0x1cf   : > { %v4689_v3 = vadd.f32 %v805_v56, %v803_v53  ;;  %v1462_v4 = vmul.f32 %v4668_v52, %v794_v60  ;;  %v646_v5 = vpop.f32.mrb[2].mxu1 }
 0x1d0   : > { %v804_v9 = vmul.f32 %v646_v5, %v4678_v61  ;;  %v648_v10 = vpop.f32.mrb[3].mxu1  ;;  %v4109_v11 = vpack.c.bf16 %v1016_v58, %v1015_v0  ;;  %v4693_v12 = vpack.c.bf16 %v915_v57, %v914_v63  ;;  %v4695_v13 = vpack.c.bf16 %v1279_v59, %v1278_v1 }
 0x1d1   : > { %v806_v14 = vmul.f32 %v648_v10, %v4687_v2  ;;  %3774 = vmatprep.mubr.f32.mxu1 %v4689_v3  ;;  %3781 = vmatprep.mubr.f32.mxu0 %v4689_v3  ;;  %v4700_v15 = vpack.c.bf16 %v1463_v62, %v1462_v4 }
 0x1d3   : > { %v4702_v16 = vadd.f32 %v806_v14, %v804_v9  ;;  %v717_v18 = vpop.f32.mrb[4].mxu1 }
 0x1d4   : > { %v809_v19 = vmul.f32 %v717_v18, %v4651_v46  ;;  %v719_v20 = vpop.f32.mrb[5].mxu1 }
 0x1d5   : > { %v811_v21 = vmul.f32 %v719_v20, %v4656_v47 }
 0x1d7   : > { %v813_v22 = vadd.f32 %v811_v21, %v809_v19  ;;  %v723_v23 = vpop.f32.mrb[6].mxu1 }
 0x1d8   : > { %v810_v24 = vmul.f32 %v723_v23, %v4678_v61  ;;  %v725_v25 = vpop.f32.mrb[7].mxu1 }
 0x1d9   : > { %v812_v26 = vmul.f32 %v725_v25, %v4687_v2  ;;  %v815_v28 = vmul.f32 %v4659_v48, %v813_v22  ;;  %v916_v29 = vmul.f32 %v4662_v49, %v813_v22  ;;  %v1179_v31 = vmul.f32 %v4665_v50, %v813_v22 }
 0x1da   : > { %v1363_v32 = vmul.f32 %v4668_v52, %v813_v22 }
 0x1db   : > { %v814_v27 = vadd.f32 %v812_v26, %v810_v24 }
 0x1dd   : > { %v816_v33 = vmul.f32 %v4659_v48, %v814_v27  ;;  %v917_v34 = vmul.f32 %v4662_v49, %v814_v27  ;;  %v1180_v35 = vmul.f32 %v4665_v50, %v814_v27  ;;  %v1364_v36 = vmul.f32 %v4668_v52, %v814_v27 }
 0x1df   : > { %v4101_v37 = vpack.c.bf16 %v816_v33, %v815_v28  ;;  %v4105_v38 = vpack.c.bf16 %v917_v34, %v916_v29  ;;  %v4117_v39 = vpack.c.bf16 %v1180_v35, %v1179_v31  ;;  %v4716_v41 = vpack.c.bf16 %v1364_v36, %v1363_v32 }
 0x1e1   : > { %4102 = vmatprep.subr.bf16.mxu1 %v4101_v37  ;;  %4106 = vmatprep.subr.bf16.mxu0 %v4105_v38 }
 0x1e2   : > { %4104 = vmatpush3.bf16.xpose.msra.mxu1 %v4101_v37  ;;  %4108 = vmatpush3.bf16.xpose.msra.mxu0 %v4105_v38 }
 0x1e3   : > { %4110 = vmatprep.subr.bf16.mxu1 %v4109_v11  ;;  %4118 = vmatprep.subr.bf16.mxu0 %v4117_v39 }
 0x1e9   : > { %3775 = vmatmul.mubr.f32.vlgmr.msra.gmra.mrb[8].mxu1 %v4702_v16  ;;  %3782 = vmatmul.mubr.f32.vlgmr.msra.gmra.mrb[4].mxu0 %v4702_v16 }
 0x1ea   : > { %4112 = vmatpush3.bf16.msra.mxu1 %v4109_v11  ;;  %4120 = vmatpush3.bf16.xpose.msra.mxu0 %v4117_v39 }
 0x1eb   : > { %3802 = vmatprep.mubr.f32.mxu0 %v4689_v3  ;;  %4114 = vmatprep.subr.bf16.mxu1 %v4693_v12 }
 0x1f1   : > { %3803 = vmatmul.mubr.f32.vlgmr.msra.gmra.mrb[6].mxu0 %v4702_v16 }
 0x2bc   : > { %v3776_v42 = vpop.f32.mrb[8].mxu1  ;;  %v3783_v43 = vpop.f32.mrb[4].mxu0 }
 0x2bd   : > { %v883_v45 = vpop.f32.mrb[9].mxu1  ;;  %v984_v51 = vpop.f32.mrb[5].mxu0  ;;  %v996_v55 = vsel %vm429_vm0, %v3783_v43, -inf  ;;  %v895_v56 = vsel %vm429_vm0, %v3776_v42, -inf }
 0x2be   : > { %v993_v53 = vsel %vm429_vm0, %v984_v51, -inf  ;;  %v892_v54 = vsel %vm429_vm0, %v883_v45, -inf }
 0x2bf   : > { %994 = vmax.xlane.f32.xlu0 %v993_v53  ;;  %893 = vmax.xlane.f32.xlu1 %v892_v54 }
 0x2c3   : > { %997 = vmax.xlane.f32.xlu0 %v996_v55  ;;  %896 = vmax.xlane.f32.xlu1 %v895_v56 }
 0x2c4   : > { %v3804_v57 = vpop.f32.mrb[6].mxu0 }
 0x2c5   : > { %v1247_v58 = vpop.f32.mrb[7].mxu0  ;;  %v1259_v59 = vsel %vm429_vm0, %v3804_v57, -inf }
 0x2c6   : > { %v1256_v60 = vsel %vm429_vm0, %v1247_v58, -inf }
 0x2c7   : > { %1257 = vmax.xlane.f32.xlu0 %v1256_v60  ;;  %1260 = vmax.xlane.f32.xlu1 %v1259_v59 }
 0x34c   : > { %v995_v62 = vpop.xlane.xlu0 %994  ;;  %v894_v63 = vpop.xlane.xlu1 %893 }
 0x34d   : > { %v999_v0 = vsub.f32 %v984_v51, %v995_v62  ;;  %v898_v1 = vsub.f32 %v883_v45, %v894_v63 }
 0x34f   : > { %v1001_v4 = vmul.f32 1.442695, %v999_v0  ;;  %v900_v5 = vmul.f32 1.442695, %v898_v1 }
 0x350   : > { %v998_v9 = vpop.xlane.xlu0 %997  ;;  %v897_v10 = vpop.xlane.xlu1 %896 }
 0x351   : > { %4360 = vpow2.f32 %v1001_v4  ;;  %v1000_v11 = vsub.f32 %v3783_v43, %v998_v9  ;;  %v899_v14 = vsub.f32 %v3776_v42, %v897_v10 }
 0x352   : > { %4362 = vpow2.f32 %v900_v5 }
 0x353   : > { %v1003_v18 = vmul.f32 1.442695, %v1000_v11  ;;  %v902_v19 = vmul.f32 1.442695, %v899_v14 }
 0x354   : > { %v1258_v20 = vpop.xlane.xlu0 %1257  ;;  %v1261_v21 = vpop.xlane.xlu1 %1260 }
 0x355   : > { %4364 = vpow2.f32 %v1003_v18  ;;  %v1262_v22 = vsub.f32 %v1247_v58, %v1258_v20  ;;  %v1263_v23 = vsub.f32 %v3804_v57, %v1261_v21  ;;  %v1547_v21 = vld [vmem:[%s5224_s4] sm:$0xff] }
 0x356   : > { %4366 = vpow2.f32 %v902_v19 }
 0x357   : > { %v1264_v24 = vmul.f32 1.442695, %v1262_v22  ;;  %v1266_v25 = vmul.f32 1.442695, %v1263_v23  ;;  %v1548_v22 = vld [vmem:[%s5224_s4 + $0x8] sm:$0xff]  ;;  %v1549_v23 = vld [vmem:[%s5224_s4 + $0x10] sm:$0xff] }
 0x359   : > { %4368 = vpow2.f32 %v1264_v24  ;;  %v4133_v24 = vpack.c.bf16 %v1548_v22, %v1547_v21  ;;  %v1694_v21 = vld [vmem:[%s5228_s8] sm:$0xff]  ;;  %v1695_v22 = vld [vmem:[%s5228_s8 + $0x8] sm:$0xff] }
 0x35a   : > { %4370 = vpow2.f32 %v1266_v25  ;;  %v1550_v25 = vld [vmem:[%s5224_s4 + $0x18] sm:$0xff] }
 0x35b   : > { %v4361_v26 = vpop.eup %4360  ;;  %4134 = vmatprep.subr.bf16.mxu0 %v4133_v24 }
 0x35c   : > { %v1005_v27 = vsel %vm429_vm0, %v4361_v26, 0.0  ;;  %v4363_v28 = vpop.eup %4362  ;;  %4136 = vmatpush3.bf16.msra.mxu0 %v4133_v24  ;;  %v1696_v24 = vld [vmem:[%s5228_s8 + $0x10] sm:$0xff] }
 0x35d   : > { %1006 = vadd.xlane.f32.xlu0 %v1005_v27  ;;  %v904_v32 = vsel %vm429_vm0, %v4363_v28, 0.0  ;;  %v1551_v27 = vld [vmem:[%s5224_s4 + $0x20] sm:$0xff] }
 0x35f   : > { %v4365_v29 = vpop.eup %4364 }
 0x360   : > { %v1008_v31 = vsel %vm429_vm0, %v4365_v29, 0.0  ;;  %v4367_v33 = vpop.eup %4366 }
 0x361   : > { %1009 = vadd.xlane.f32.xlu1 %v1008_v31  ;;  %905 = vadd.xlane.f32.xlu0 %v904_v32  ;;  %v907_v36 = vsel %vm429_vm0, %v4367_v33, 0.0  ;;  %v1553_v31 = vld [vmem:[%s5224_s4 + $0x30] sm:$0xff]  ;;  %v1554_v32 = vld [vmem:[%s5224_s4 + $0x38] sm:$0xff] }
 0x363   : > { %v4369_v34 = vpop.eup %4368 }
 0x364   : > { %v1268_v35 = vsel %vm429_vm0, %v4369_v34, 0.0  ;;  %v4371_v37 = vpop.eup %4370 }
 0x365   : > { %1269 = vadd.xlane.f32.xlu0 %v1268_v35  ;;  %908 = vadd.xlane.f32.xlu1 %v907_v36  ;;  %v1271_v38 = vsel %vm429_vm0, %v4371_v37, 0.0  ;;  %v1556_v35 = vld [vmem:[%s5224_s4 + $0x48] sm:$0xff] }
 0x369   : > { %1272 = vadd.xlane.f32.xlu1 %v1271_v38  ;;  %v1558_v38 = vld [vmem:[%s5224_s4 + $0x58] sm:$0xff] }
 0x3ea   : > { %v1007_v39 = vpop.xlane.xlu0 %1006 }
 0x3eb   : > { %4372 = vrcp.f32 %v1007_v39 }
 0x3ee   : > { %v906_v42 = vpop.xlane.xlu0 %905  ;;  %v1010_v43 = vpop.xlane.xlu1 %1009 }
 0x3ef   : > { %4374 = vrcp.f32 %v906_v42  ;;  %v1559_v42 = vld [vmem:[%s5224_s4 + $0x60] sm:$0xff] }
 0x3f0   : > { %4376 = vrcp.f32 %v1010_v43  ;;  %v1560_v43 = vld [vmem:[%s5224_s4 + $0x68] sm:$0xff] }
 0x3f2   : > { %v909_v45 = vpop.xlane.xlu1 %908  ;;  %v1270_v51 = vpop.xlane.xlu0 %1269 }
 0x3f3   : > { %4378 = vrcp.f32 %v909_v45  ;;  %v4157_v45 = vpack.c.bf16 %v1560_v43, %v1559_v42 }
 0x3f4   : > { %4380 = vrcp.f32 %v1270_v51  ;;  %v1561_v51 = vld [vmem:[%s5224_s4 + $0x70] sm:$0xff] }
 0x3f5   : > { %v4373_v53 = vpop.eup %4372 }
 0x3f6   : > { %v1013_v54 = vmul.f32 %v4373_v53, %v4361_v26  ;;  %v1273_v59 = vpop.xlane.xlu1 %1272  ;;  %v4137_v26 = vpack.c.bf16 %v1550_v25, %v1549_v23  ;;  %v1562_v53 = vld [vmem:[%s5224_s4 + $0x78] sm:$0xff]  ;;  %v4165_v23 = vpack.c.bf16 %v1695_v22, %v1694_v21  ;;  %v3487_v22 = vld [vmem:[%s5221_s1 + $0xc8] sm:$0xff] }
 0x3f7   : > { %4382 = vrcp.f32 %v1273_v59  ;;  %v1697_v25 = vld [vmem:[%s5228_s8 + $0x18] sm:$0xff] }
 0x3f8   : > { %3788 = vmatprep.mubr.msk.f32.mxu1 %vm429_vm0, %v1013_v54  ;;  %4138 = vmatprep.subr.bf16.mxu0 %v4137_v26  ;;  %v4161_v54 = vpack.c.bf16 %v1562_v53, %v1561_v51  ;;  %v3477_v51 = vld [vmem:[%s5227_s7] ss:$0 sm:$0xff] }
 0x3f9   : > { %v4375_v55 = vpop.eup %4374  ;;  %4140 = vmatpush3.bf16.msra.mxu0 %v4137_v26  ;;  %v4169_v26 = vpack.c.bf16 %v1697_v25, %v1696_v24  ;;  %v3478_v24 = vld [vmem:[%s5229_s9] ss:$0 sm:$0xff] }
 0x3fa   : > { %v4377_v56 = vpop.eup %4376  ;;  %v912_v57 = vmul.f32 %v4375_v55, %v4363_v28  ;;  %v1552_v28 = vld [vmem:[%s5224_s4 + $0x28] sm:$0xff] }
 0x3fb   : > { %v1014_v58 = vmul.f32 %v4377_v56, %v4365_v29  ;;  %v4141_v29 = vpack.c.bf16 %v1552_v28, %v1551_v27  ;;  %v1804_v27 = vld [vmem:[%s5230_s10] sm:$0xff]  ;;  %v1805_v28 = vld [vmem:[%s5230_s10 + $0x8] sm:$0xff] }
 0x3fd   : > { %3789 = vmatmul.mubr.msk.f32.vlgmr.msra.gmra.mrb[10].mxu1 %vm429_vm0, %v1014_v58  ;;  %v4379_v60 = vpop.eup %4378  ;;  %4142 = vmatprep.subr.bf16.mxu0 %v4141_v29 }
 0x3fe   : > { %4116 = vmatpush3.bf16.msra.mxu1 %v4693_v12  ;;  %3795 = vmatprep.mubr.msk.f32.mxu1 %vm429_vm0, %v912_v57  ;;  %v4381_v62 = vpop.eup %4380  ;;  %v913_v63 = vmul.f32 %v4379_v60, %v4367_v33  ;;  %v4145_v33 = vpack.c.bf16 %v1554_v32, %v1553_v31 }
 0x3ff   : > { %4122 = vmatprep.subr.bf16.mxu1 %v4695_v13  ;;  %v1276_v0 = vmul.f32 %v4381_v62, %v4369_v34  ;;  %v1555_v34 = vld [vmem:[%s5224_s4 + $0x40] sm:$0xff]  ;;  %4144 = vmatpush3.bf16.msra.mxu0 %v4141_v29  ;;  %v4173_v29 = vpack.c.bf16 %v1805_v28, %v1804_v27 }
 0x400   : > { %4146 = vmatprep.subr.bf16.mxu0 %v4145_v33  ;;  %v4149_v36 = vpack.c.bf16 %v1556_v35, %v1555_v34 }
 0x401   : > { %v4383_v1 = vpop.eup %4382 }
 0x402   : > { %v1277_v4 = vmul.f32 %v4383_v1, %v4371_v37  ;;  %v1557_v37 = vld [vmem:[%s5224_s4 + $0x50] sm:$0xff]  ;;  %v3475_v1 = vld [vmem:[%s5225_s5] ss:$0 sm:$0xff] }
 0x403   : > { %4148 = vmatpush3.bf16.msra.mxu0 %v4145_v33  ;;  %v4153_v39 = vpack.c.bf16 %v1558_v38, %v1557_v37  ;;  %v3476_v38 = vld [vmem:[%s5226_s6] ss:$0 sm:$0xff] }
 0x404   : > { %4150 = vmatprep.subr.bf16.mxu0 %v4149_v36 }
 0x405   : > { %3796 = vmatmul.mubr.msk.f32.vlgmr.msra.gmra.mrb[10].mxu1 %vm429_vm0, %v913_v63 }
 0x406   : > { %4124 = vmatpush3.bf16.msra.mxu1 %v4695_v13  ;;  %3809 = vmatprep.mubr.msk.f32.mxu1 %vm429_vm0, %v1276_v0 }
 0x407   : > { %4126 = vmatprep.subr.bf16.mxu1 %v4716_v41  ;;  %4152 = vmatpush3.bf16.msra.mxu0 %v4149_v36 }
 0x408   : > { %4154 = vmatprep.subr.bf16.mxu0 %v4153_v39 }
 0x40b   : > { %4156 = vmatpush3.bf16.msra.mxu0 %v4153_v39 }
 0x40c   : > { %4158 = vmatprep.subr.bf16.mxu0 %v4157_v45 }
 0x40d   : > { %3810 = vmatmul.mubr.msk.f32.vlgmr.msra.gmra.mrb[10].mxu1 %vm429_vm0, %v1277_v4 }
 0x40e   : > { %3816 = vmatprep.mubr.f32.mxu1 %v4689_v3 }
 0x40f   : > { %4128 = vmatpush3.bf16.xpose.msra.mxu1 %v4716_v41  ;;  %4160 = vmatpush3.bf16.msra.mxu0 %v4157_v45 }
 0x410   : > { %4130 = vmatprep.subr.bf16.mxu1 %v4700_v15  ;;  %4162 = vmatprep.subr.bf16.mxu0 %v4161_v54 }
 0x413   : > { %4164 = vmatpush3.bf16.msra.mxu0 %v4161_v54 }
 0x416   : > { %3817 = vmatmul.mubr.f32.vlgmr.msra.gmra.mrb[12].mxu1 %v4702_v16 }
 0x417   : > { %4132 = vmatpush3.bf16.msra.mxu1 %v4700_v15 }
 0x418   : > { %4166 = vmatprep.subr.bf16.mxu1 %v4165_v23 }
 0x4e9   : > { %v3818_v12 = vpop.f32.mrb[12].mxu1 }
 0x4ea   : > { %v1431_v13 = vpop.f32.mrb[13].mxu1  ;;  %v1443_v5 = vsel %vm429_vm0, %v3818_v12, -inf }
 0x4eb   : > { %1444 = vmax.xlane.f32.xlu1 %v1443_v5  ;;  %v1440_v9 = vsel %vm429_vm0, %v1431_v13, -inf }
 0x4ec   : > { %1441 = vmax.xlane.f32.xlu0 %v1440_v9 }
 0x578   : > { %v1445_v10 = vpop.xlane.xlu1 %1444 }
 0x579   : > { %v1447_v11 = vsub.f32 %v3818_v12, %v1445_v10  ;;  %v1442_v14 = vpop.xlane.xlu0 %1441 }
 0x57a   : > { %v1446_v3 = vsub.f32 %v1431_v13, %v1442_v14 }
 0x57b   : > { %v1450_v18 = vmul.f32 1.442695, %v1447_v11 }
 0x57c   : > { %v1448_v41 = vmul.f32 1.442695, %v1446_v3 }
 0x57d   : > { %4384 = vpow2.f32 %v1450_v18 }
 0x57e   : > { %4386 = vpow2.f32 %v1448_v41 }
 0x587   : > { %v4385_v19 = vpop.eup %4384 }
 0x588   : > { %v4387_v16 = vpop.eup %4386  ;;  %v1455_v15 = vsel %vm429_vm0, %v4385_v19, 0.0 }
 0x589   : > { %1456 = vadd.xlane.f32.xlu1 %v1455_v15  ;;  %v1452_v20 = vsel %vm429_vm0, %v4387_v16, 0.0 }
 0x58a   : > { %1453 = vadd.xlane.f32.xlu0 %v1452_v20 }
 0x616   : > { %v1457_v55 = vpop.xlane.xlu1 %1456 }
 0x617   : > { %4388 = vrcp.f32 %v1457_v55  ;;  %v1454_v56 = vpop.xlane.xlu0 %1453 }
 0x618   : > { %4390 = vrcp.f32 %v1454_v56  ;;  %v1806_v56 = vld [vmem:[%s5230_s10 + $0x10] sm:$0xff] }
 0x621   : > { %v4389_v57 = vpop.eup %4388 }
 0x622   : > { %v4391_v58 = vpop.eup %4390  ;;  %v1461_v60 = vmul.f32 %v4389_v57, %v4385_v19  ;;  %v1807_v57 = vld [vmem:[%s5230_s10 + $0x18] sm:$0xff] }
 0x623   : > { %v1460_v59 = vmul.f32 %v4391_v58, %v4387_v16  ;;  %v4177_v58 = vpack.c.bf16 %v1807_v57, %v1806_v56  ;;  %v3493_v57 = vld [vmem:[%s5221_s1 + $0xf8] sm:$0xff] }
 0x625   : > { %3823 = vmatprep.mubr.msk.f32.mxu1 %vm429_vm0, %v1460_v59  ;;  %v1808_v59 = vld [vmem:[%s5230_s10 + $0x20] sm:$0xff] }
 0x626   : > { %3824 = vmatmul.mubr.msk.f32.vlgmr.msra.gmra.mrb[10].mxu1 %vm429_vm0, %v1461_v60  ;;  %v1809_v60 = vld [vmem:[%s5230_s10 + $0x28] sm:$0xff] }
 0x627   : > { %4168 = vmatpush3.bf16.msra.mxu1 %v4165_v23 }
 0x628   : > { %4170 = vmatprep.subr.bf16.mxu1 %v4169_v26 }
 0x62b   : > { %4172 = vmatpush3.bf16.msra.mxu1 %v4169_v26 }
 0x62c   : > { %4174 = vmatprep.subr.bf16.mxu1 %v4173_v29 }
 0x6f9   : > { %v3825_v62 = vpop.f32.mrb[10].mxu1 }
 0x6fa   : > { %v1536_v63 = vpop.f32.mrb[11].mxu1 }
 0x6fb   : > { %3858 = vmatprep.mubr.f32.mxu0 %v1536_v63  ;;  %v1810_v63 = vld [vmem:[%s5230_s10 + $0x30] sm:$0xff] }
 0x6fc   : > { %3859 = vmatmul.mubr.f32.vlgmr.msra.gmra.mrb[8].mxu0 %v3825_v62  ;;  %v4181_v62 = vpack.c.bf16 %v1809_v60, %v1808_v59  ;;  %v3492_v60 = vld [vmem:[%s5221_s1 + $0xf0] sm:$0xff] }
 0x6fd   : > { %1997 = vmatprep.mubr.f32.mxu0 %v4448_v6 }
 0x7cf   : > { %v3860_v0 = vpop.f32.mrb[8].mxu0 }
 0x7d0   : > { %v1639_v4 = vadd.f32 %v3860_v0, %v4617_v40  ;;  %v1629_v12 = vpop.f32.mrb[9].mxu0  ;;  %v1811_v0 = vld [vmem:[%s5230_s10 + $0x38] sm:$0xff] }
 0x7d1   : > { %v1638_v13 = vadd.f32 %v1629_v12, %v4625_v44  ;;  %v1813_v12 = vld [vmem:[%s5230_s10 + $0x48] sm:$0xff] }
 0x7d2   : > { %v4810_v5 = vadd.f32 %v3475_v1, %v1639_v4  ;;  %v1812_v4 = vld [vmem:[%s5230_s10 + $0x40] sm:$0xff] }
 0x7d3   : > { %v4812_v9 = vadd.f32 %v3475_v1, %v1638_v13  ;;  %v4185_v1 = vpack.c.bf16 %v1811_v0, %v1810_v63  ;;  %v1814_v13 = vld [vmem:[%s5230_s10 + $0x50] sm:$0xff]  ;;  %v3485_v0 = vld [vmem:[%s5221_s1 + $0xb8] sm:$0xff] }
 0x7d4   : > { %v1652_v10 = vsel %vm567_vm4, %v4810_v5, 0.0 }
 0x7d5   : > { %1653 = vadd.xlane.f32.xlu1 %v1652_v10  ;;  %v1649_v11 = vsel %vm567_vm4, %v4812_v9, 0.0  ;;  %v4189_v10 = vpack.c.bf16 %v1813_v12, %v1812_v4 }
 0x7d6   : > { %1650 = vadd.xlane.f32.xlu0 %v1649_v11  ;;  %v1815_v11 = vld [vmem:[%s5230_s10 + $0x58] sm:$0xff] }
 0x862   : > { %v1654_v14 = vpop.xlane.xlu1 %1653 }
 0x863   : > { %v1657_v3 = vmul.f32 0.03125, %v1654_v14  ;;  %v1651_v18 = vpop.xlane.xlu0 %1650  ;;  %v4193_v14 = vpack.c.bf16 %v1815_v11, %v1814_v13  ;;  %v3484_v13 = vld [vmem:[%s5221_s1 + $0xb0] sm:$0xff]  ;;  %v3481_v11 = vld [vmem:[%s5231_s11] ss:$0 sm:$0xff] }
 0x864   : > { %v1656_v41 = vmul.f32 0.03125, %v1651_v18  ;;  %v1817_v18 = vld [vmem:[%s5230_s10 + $0x68] sm:$0xff] }
 0x865   : > { %v1659_v40 = vsub.f32 %v4810_v5, %v1657_v3  ;;  %v1816_v3 = vld [vmem:[%s5230_s10 + $0x60] sm:$0xff] }
 0x866   : > { %v1658_v44 = vsub.f32 %v4812_v9, %v1656_v41  ;;  %v4197_v41 = vpack.c.bf16 %v1817_v18, %v1816_v3  ;;  %v3495_v3 = vld [vmem:[%s5221_s1 + $0x108] sm:$0xff]  ;;  %v3500_v18 = vld [vmem:[%s5221_s1 + $0x130] sm:$0xff] }
 0x867   : > { %v1661_v19 = vmul.f32 %v1659_v40, %v1659_v40 }
 0x868   : > { %v1660_v16 = vmul.f32 %v1658_v44, %v1658_v44 }
 0x869   : > { %v1665_v15 = vsel %vm567_vm4, %v1661_v19, 0.0 }
 0x86a   : > { %1666 = vadd.xlane.f32.xlu1 %v1665_v15  ;;  %v1662_v20 = vsel %vm567_vm4, %v1660_v16, 0.0  ;;  %v3483_v16 = vld [vmem:[%s5221_s1 + $0xa8] sm:$0xff]  ;;  %v3488_v15 = vld [vmem:[%s5221_s1 + $0xd0] sm:$0xff] }
 0x86b   : > { %1663 = vadd.xlane.f32.xlu0 %v1662_v20  ;;  %v3482_v20 = vld [vmem:[%s5221_s1 + $0xa0] sm:$0xff]  ;;  %v4205_v21 = vpack.c.bf16 %v3488_v15, %v3483_v16  ;;  %v4217_v16 = vpack.c.bf16 %v3500_v18, %v3495_v3 }
 0x86c   : > { %v4207_v23 = vpack.c.bf16 %v3487_v22, %v3482_v20  ;;  %v3494_v15 = vld [vmem:[%s5221_s1 + $0x100] sm:$0xff]  ;;  %v3499_v20 = vld [vmem:[%s5221_s1 + $0x128] sm:$0xff] }
 0x86d   : > { %4206 = vmatprep.subr.bf16.mxu0 %v4205_v21  ;;  %v3486_v21 = vld [vmem:[%s5221_s1 + $0xc0] sm:$0xff] }
 0x86e   : > { %4208 = vmatpush1.bf16.msra.mxu0 %v4207_v23 }
 0x8f7   : > { %v1667_v31 = vpop.xlane.xlu1 %1666 }
 0x8f8   : > { %v1669_v32 = vmul.f32 0.03125, %v1667_v31  ;;  %v1664_v33 = vpop.xlane.xlu0 %1663 }
 0x8f9   : > { %v1668_v34 = vmul.f32 0.03125, %v1664_v33 }
 0x8fa   : > { %v1671_v35 = vadd.f32 1e-05, %v1669_v32 }
 0x8fb   : > { %v1670_v36 = vadd.f32 1e-05, %v1668_v34 }
 0x8fc   : > { %4392 = vrsqrt.f32 %v1671_v35 }
 0x8fd   : > { %4394 = vrsqrt.f32 %v1670_v36 }
 0x906   : > { %v4393_v37 = vpop.eup %4392 }
 0x907   : > { %v4395_v39 = vpop.eup %4394  ;;  %v1675_v42 = vmul.f32 %v4393_v37, %v1659_v40  ;;  %v1818_v40 = vld [vmem:[%s5230_s10 + $0x70] sm:$0xff] }
 0x908   : > { %v1674_v43 = vmul.f32 %v4395_v39, %v1658_v44  ;;  %v1819_v44 = vld [vmem:[%s5230_s10 + $0x78] sm:$0xff] }
 0x909   : > { %v1684_v45 = vmul.f32 %v3476_v38, %v1675_v42  ;;  %v4201_v19 = vpack.c.bf16 %v1819_v44, %v1818_v40 }
 0x90a   : > { %v1683_v53 = vmul.f32 %v3476_v38, %v1674_v43 }
 0x90b   : > { %v1693_v55 = vadd.f32 %v3477_v51, %v1684_v45 }
 0x90c   : > { %v1692_v54 = vadd.f32 %v3477_v51, %v1683_v53 }
 0x90e   : > { %3869 = vmatprep.mubr.msk.f32.mxu1 %vm567_vm4, %v1692_v54 }
 0x90f   : > { %3870 = vmatmul.mubr.msk.f32.vlgmr.msra.gmra.mrb[14].mxu1 %vm567_vm4, %v1693_v55 }
 0x910   : > { %4176 = vmatpush3.bf16.msra.mxu1 %v4173_v29 }
 0x911   : > { %4178 = vmatprep.subr.bf16.mxu1 %v4177_v58 }
 0x914   : > { %4180 = vmatpush3.bf16.msra.mxu1 %v4177_v58  ;;  %v3498_v58 = vld [vmem:[%s5221_s1 + $0x120] sm:$0xff] }
 0x915   : > { %4182 = vmatprep.subr.bf16.mxu1 %v4181_v62  ;;  %v4209_v59 = vpack.c.bf16 %v3498_v58, %v3493_v57 }
 0x917   : > { %4210 = vmatprep.subr.bf16.mxu0 %v4209_v59 }
 0x918   : > { %4184 = vmatpush3.bf16.msra.mxu1 %v4181_v62  ;;  %v3497_v62 = vld [vmem:[%s5221_s1 + $0x118] sm:$0xff] }
 0x919   : > { %4186 = vmatprep.subr.bf16.mxu1 %v4185_v1  ;;  %v4211_v63 = vpack.c.bf16 %v3497_v62, %v3492_v60 }
 0x91b   : > { %4212 = vmatpush1.bf16.msra.mxu0 %v4211_v63 }
 0x91c   : > { %4188 = vmatpush3.bf16.msra.mxu1 %v4185_v1  ;;  %v3490_v1 = vld [vmem:[%s5221_s1 + $0xe0] sm:$0xff] }
 0x91d   : > { %4190 = vmatprep.subr.bf16.mxu1 %v4189_v10  ;;  %v4213_v4 = vpack.c.bf16 %v3490_v1, %v3485_v0 }
 0x91f   : > { %4214 = vmatprep.subr.bf16.mxu0 %v4213_v4 }
 0x920   : > { %4192 = vmatpush3.bf16.msra.mxu1 %v4189_v10  ;;  %v3489_v10 = vld [vmem:[%s5221_s1 + $0xd8] sm:$0xff] }
 0x921   : > { %4194 = vmatprep.subr.bf16.mxu1 %v4193_v14  ;;  %v4215_v40 = vpack.c.bf16 %v3489_v10, %v3484_v13 }
 0x924   : > { %4196 = vmatpush3.bf16.msra.mxu1 %v4193_v14 }
 0x925   : > { %4198 = vmatprep.subr.bf16.mxu1 %v4197_v41 }
 0x928   : > { %4200 = vmatpush3.bf16.msra.mxu1 %v4197_v41 }
 0x929   : > { %4202 = vmatprep.subr.bf16.mxu1 %v4201_v19 }
 0x92c   : > { %4204 = vmatpush3.bf16.msra.mxu1 %v4201_v19 }
 0x9e2   : > { %v3871_v25 = vpop.f32.mrb[14].mxu1 }
 0x9e3   : > { %v1783_v26 = vadd.f32 %v3871_v25, %v3478_v24  ;;  %v1777_v27 = vpop.f32.mrb[15].mxu1  ;;  %v3501_v25 = vld [vmem:[%s5221_s1 + $0x138] sm:$0xff] }
 0x9e4   : > { %v1778_v28 = vadd.f32 %v3478_v24, %v1777_v27  ;;  %v3496_v24 = vld [vmem:[%s5221_s1 + $0x110] sm:$0xff] }
 0x9e5   : > { %v1789_v29 = vmul.f32 0.044715, %v1783_v26  ;;  %v1787_v54 = vmul.f32 0.5, %v1783_v26 }
 0x9e6   : > { %v1788_v31 = vmul.f32 0.044715, %v1778_v28  ;;  %v1786_v51 = vmul.f32 0.5, %v1778_v28 }
 0x9e7   : > { %v1791_v32 = vmul.f32 %v1789_v29, %v1783_v26 }
 0x9e8   : > { %v1790_v33 = vmul.f32 %v1788_v31, %v1778_v28 }
 0x9e9   : > { %v1793_v34 = vmul.f32 %v1791_v32, %v1783_v26 }
 0x9ea   : > { %v1792_v35 = vmul.f32 %v1790_v33, %v1778_v28 }
 0x9eb   : > { %v1795_v36 = vadd.f32 %v1793_v34, %v1783_v26  ;;  %v4225_v26 = vpack.c.bf16 %v3501_v25, %v3496_v24 }
 0x9ec   : > { %v1794_v37 = vadd.f32 %v1792_v35, %v1778_v28 }
 0x9ed   : > { %v1797_v38 = vmul.f32 0.7978846, %v1795_v36 }
 0x9ee   : > { %v1796_v39 = vmul.f32 0.7978846, %v1794_v37 }
 0x9ef   : > { %4396 = vtanh.f32 %v1797_v38 }
 0x9f0   : > { %4398 = vtanh.f32 %v1796_v39 }
 0x9f9   : > { %v4397_v42 = vpop.eup %4396 }
 0x9fa   : > { %v4399_v43 = vpop.eup %4398  ;;  %v1801_v45 = vadd.f32 1.0, %v4397_v42 }
 0x9fb   : > { %v1800_v53 = vadd.f32 1.0, %v4399_v43 }
 0x9fc   : > { %v1803_v56 = vmul.f32 %v1801_v45, %v1787_v54 }
 0x9fd   : > { %v1802_v55 = vmul.f32 %v1800_v53, %v1786_v51 }
 0x9ff   : > { %3904 = vmatprep.mubr.f32.mxu1 %v1802_v55 }
 0xa00   : > { %3905 = vmatmul.mubr.f32.vlgmr.msra.gmra.mrb[16].mxu1 %v1803_v56 }
 0xad3   : > { %v3906_v12 = vpop.f32.mrb[16].mxu1 }
 0xad4   : > { %v1886_v14 = vpop.f32.mrb[17].mxu1  ;;  %v1896_v44 = vadd.f32 %v3906_v12, %v4810_v5  ;;  %v4219_v5 = vpack.c.bf16 %v3499_v20, %v3494_v15 }
 0xad5   : > { %v1895_v41 = vadd.f32 %v1886_v14, %v4812_v9  ;;  %v3491_v9 = vld [vmem:[%s5221_s1 + $0xe8] sm:$0xff] }
 0xad6   : > { %v4957_v22 = vadd.f32 %v3481_v11, %v1896_v44  ;;  %v4221_v23 = vpack.c.bf16 %v3491_v9, %v3486_v21 }
 0xad7   : > { %v4940_v19 = vadd.f32 %v3481_v11, %v1895_v41 }
 0xad9   : > { %3502 = vmatmul.mubr.msk.f32.vlgmr.msra.gmra.mrb[10].mxu0 %vm567_vm4, %v4940_v19 }
 0xada   : > { %4216 = vmatpush1.bf16.msra.mxu0 %v4215_v40  ;;  %2003 = vmatprep.mubr.f32.mxu0 %v4448_v6 }
 0xadb   : > { %4218 = vmatprep.subr.bf16.mxu0 %v4217_v16 }
 0xadd   : > { %3503 = vmatmul.mubr.msk.f32.gmra.mrb[12].mxu0 %vm567_vm4, %v4957_v22 }
 0xade   : > { %4220 = vmatpush1.bf16.msra.mxu0 %v4219_v5  ;;  %2074 = vmatprep.mubr.f32.mxu0 %v4448_v6 }
 0xadf   : > { %4222 = vmatprep.subr.bf16.mxu0 %v4221_v23 }
 0xae1   : > { %3504 = vmatmul.mubr.msk.f32.vlgmr.msra.gmra.mrb[14].mxu0 %vm567_vm4, %v4940_v19 }
 0xae2   : > { %4224 = vmatpush3.bf16.msra.mxu0 %v4221_v23  ;;  %2080 = vmatprep.mubr.f32.mxu0 %v4448_v6 }
 0xae3   : > { %4226 = vmatprep.subr.bf16.mxu0 %v4225_v26 }
 0xae5   : > { %3505 = vmatmul.mubr.msk.f32.gmra.mrb[16].mxu0 %vm567_vm4, %v4957_v22 }
 0xae6   : > { %4228 = vmatpush3.bf16.msra.mxu0 %v4225_v26  ;;  %3915 = vmatprep.mubr.msk.f32.mxu0 %vm567_vm4, %v4940_v19 }
 0xae9   : > { %3916 = vmatmul.mubr.msk.f32.vlgmr.msra.gmra.mrb[18].mxu0 %vm567_vm4, %v4957_v22 }
 0xbac   : > { %v1999_v27 = vpop.f32.mrb[10].mxu0 }
 0xbad   : > { %v2162_v28 = vmul.f32 %v1999_v27, %v4651_v46  ;;  %v2001_v29 = vpop.f32.mrb[11].mxu0 }
 0xbae   : > { %v2164_v31 = vmul.f32 %v2001_v29, %v4656_v47 }
 0xbb0   : > { %v4979_v32 = vadd.f32 %v2164_v31, %v2162_v28  ;;  %v2005_v33 = vpop.f32.mrb[12].mxu0 }
 0xbb1   : > { %v2163_v34 = vmul.f32 %v2005_v33, %v4678_v61  ;;  %v2007_v35 = vpop.f32.mrb[13].mxu0 }
 0xbb2   : > { %v2165_v36 = vmul.f32 %v2007_v35, %v4687_v2  ;;  %3922 = vmatprep.mubr.f32.mxu1 %v4979_v32  ;;  %3929 = vmatprep.mubr.f32.mxu0 %v4979_v32 }
 0xbb4   : > { %v4985_v37 = vadd.f32 %v2165_v36, %v2163_v34  ;;  %v2076_v38 = vpop.f32.mrb[14].mxu0 }
 0xbb5   : > { %v2168_v39 = vmul.f32 %v2076_v38, %v4651_v46  ;;  %v2078_v42 = vpop.f32.mrb[15].mxu0 }
 0xbb6   : > { %v2170_v43 = vmul.f32 %v2078_v42, %v4656_v47 }
 0xbb8   : > { %v2172_v45 = vadd.f32 %v2170_v43, %v2168_v39  ;;  %v2082_v51 = vpop.f32.mrb[16].mxu0 }
 0xbb9   : > { %v2169_v53 = vmul.f32 %v2082_v51, %v4678_v61  ;;  %v2084_v54 = vpop.f32.mrb[17].mxu0 }
 0xbba   : > { %v2171_v55 = vmul.f32 %v2084_v54, %v4687_v2  ;;  %v2174_v56 = vmul.f32 %v4659_v48, %v2172_v45  ;;  %v2275_v59 = vmul.f32 %v4662_v49, %v2172_v45  ;;  %v2538_v60 = vmul.f32 %v4665_v50, %v2172_v45 }
 0xbbb   : > { %v2722_v46 = vmul.f32 %v4668_v52, %v2172_v45 }
 0xbbc   : > { %v2173_v57 = vadd.f32 %v2171_v55, %v2169_v53  ;;  %v3917_v58 = vpop.f32.mrb[18].mxu0 }
 0xbbd   : > { %v2274_v62 = vmul.f32 %v3917_v58, %v4659_v48  ;;  %v2375_v47 = vmul.f32 %v3917_v58, %v4662_v49  ;;  %v2638_v63 = vmul.f32 %v3917_v58, %v4665_v50  ;;  %v2822_v61 = vmul.f32 %v3917_v58, %v4668_v52  ;;  %v2153_v0 = vpop.f32.mrb[19].mxu0 }
 0xbbe   : > { %v2273_v2 = vmul.f32 %v4659_v48, %v2153_v0  ;;  %v2374_v1 = vmul.f32 %v4662_v49, %v2153_v0  ;;  %v2637_v4 = vmul.f32 %v4665_v50, %v2153_v0  ;;  %v2821_v12 = vmul.f32 %v4668_v52, %v2153_v0 }
 0xbbf   : > { %v2175_v13 = vmul.f32 %v4659_v48, %v2173_v57  ;;  %v2276_v10 = vmul.f32 %v4662_v49, %v2173_v57  ;;  %v2539_v11 = vmul.f32 %v4665_v50, %v2173_v57  ;;  %v2723_v14 = vmul.f32 %v4668_v52, %v2173_v57 }
 0xbc0   : > { %v4237_v3 = vpack.c.bf16 %v2375_v47, %v2374_v1  ;;  %v5007_v18 = vpack.c.bf16 %v2274_v62, %v2273_v2  ;;  %v5009_v41 = vpack.c.bf16 %v2638_v63, %v2637_v4  ;;  %v5011_v40 = vpack.c.bf16 %v2822_v61, %v2821_v12 }
 0xbc1   : > { %v4229_v44 = vpack.c.bf16 %v2175_v13, %v2174_v56  ;;  %v4233_v16 = vpack.c.bf16 %v2276_v10, %v2275_v59  ;;  %v4245_v15 = vpack.c.bf16 %v2539_v11, %v2538_v60  ;;  %v5013_v20 = vpack.c.bf16 %v2723_v14, %v2722_v46 }
 0xbc3   : > { %4230 = vmatprep.subr.bf16.mxu1 %v4229_v44  ;;  %4234 = vmatprep.subr.bf16.mxu0 %v4233_v16 }
 0xbc4   : > { %4232 = vmatpush3.bf16.xpose.msra.mxu1 %v4229_v44  ;;  %4236 = vmatpush3.bf16.xpose.msra.mxu0 %v4233_v16 }
 0xbc5   : > { %4238 = vmatprep.subr.bf16.mxu1 %v4237_v3  ;;  %4246 = vmatprep.subr.bf16.mxu0 %v4245_v15 }
 0xbcb   : > { %3923 = vmatmul.mubr.f32.vlgmr.msra.gmra.mrb[18].mxu1 %v4985_v37  ;;  %3930 = vmatmul.mubr.f32.vlgmr.msra.gmra.mrb[20].mxu0 %v4985_v37 }
 0xbcc   : > { %4240 = vmatpush3.bf16.msra.mxu1 %v4237_v3  ;;  %4248 = vmatpush3.bf16.xpose.msra.mxu0 %v4245_v15 }
 0xbcd   : > { %3950 = vmatprep.mubr.f32.mxu0 %v4979_v32  ;;  %4242 = vmatprep.subr.bf16.mxu1 %v5007_v18 }
 0xbd3   : > { %3951 = vmatmul.mubr.f32.vlgmr.msra.gmra.mrb[22].mxu0 %v4985_v37 }
 0xc9e   : > { %v3924_v48 = vpop.f32.mrb[18].mxu1  ;;  %v3931_v49 = vpop.f32.mrb[20].mxu0 }
 0xc9f   : > { %v2242_v50 = vpop.f32.mrb[19].mxu1  ;;  %v2343_v52 = vpop.f32.mrb[21].mxu0  ;;  %v2355_v21 = vsel %vm429_vm0, %v3931_v49, -inf  ;;  %v2254_v5 = vsel %vm429_vm0, %v3924_v48, -inf }
 0xca0   : > { %2356 = vmax.xlane.f32.xlu1 %v2355_v21  ;;  %v2352_v9 = vsel %vm429_vm0, %v2343_v52, -inf  ;;  %v2251_v23 = vsel %vm429_vm0, %v2242_v50, -inf }
 0xca1   : > { %2353 = vmax.xlane.f32.xlu0 %v2352_v9 }
 0xca4   : > { %2255 = vmax.xlane.f32.xlu1 %v2254_v5 }
 0xca5   : > { %2252 = vmax.xlane.f32.xlu0 %v2251_v23 }
 0xca6   : > { %v3952_v24 = vpop.f32.mrb[22].mxu0 }
 0xca7   : > { %v2606_v25 = vpop.f32.mrb[23].mxu0  ;;  %v2618_v26 = vsel %vm429_vm0, %v3952_v24, -inf }
 0xca8   : > { %2619 = vmax.xlane.f32.xlu1 %v2618_v26  ;;  %v2615_v27 = vsel %vm429_vm0, %v2606_v25, -inf }
 0xca9   : > { %2616 = vmax.xlane.f32.xlu0 %v2615_v27 }
 0xd2d   : > { %v2357_v28 = vpop.xlane.xlu1 %2356 }
 0xd2e   : > { %v2359_v29 = vsub.f32 %v3931_v49, %v2357_v28  ;;  %v2354_v31 = vpop.xlane.xlu0 %2353 }
 0xd2f   : > { %v2358_v33 = vsub.f32 %v2343_v52, %v2354_v31 }
 0xd30   : > { %v2362_v34 = vmul.f32 1.442695, %v2359_v29 }
 0xd31   : > { %v2360_v35 = vmul.f32 1.442695, %v2358_v33  ;;  %v2256_v36 = vpop.xlane.xlu1 %2255 }
 0xd32   : > { %4400 = vpow2.f32 %v2362_v34  ;;  %v2258_v38 = vsub.f32 %v3924_v48, %v2256_v36  ;;  %v2253_v39 = vpop.xlane.xlu0 %2252  ;;  %v3517_v36 = vld [vmem:[%s5224_s4 + $0x88] sm:$0xff] }
 0xd33   : > { %4402 = vpow2.f32 %v2360_v35  ;;  %v2257_v42 = vsub.f32 %v2242_v50, %v2253_v39  ;;  %v3516_v35 = vld [vmem:[%s5224_s4 + $0x80] sm:$0xff] }
 0xd34   : > { %v2261_v43 = vmul.f32 1.442695, %v2258_v38  ;;  %v3518_v38 = vld [vmem:[%s5224_s4 + $0x90] sm:$0xff]  ;;  %v4261_v39 = vpack.c.bf16 %v3517_v36, %v3516_v35 }
 0xd35   : > { %v2259_v45 = vmul.f32 1.442695, %v2257_v42  ;;  %v2620_v51 = vpop.xlane.xlu1 %2619  ;;  %v3519_v42 = vld [vmem:[%s5224_s4 + $0x98] sm:$0xff] }
 0xd36   : > { %4404 = vpow2.f32 %v2261_v43  ;;  %v2622_v53 = vsub.f32 %v3952_v24, %v2620_v51  ;;  %v2617_v54 = vpop.xlane.xlu0 %2616  ;;  %v4265_v43 = vpack.c.bf16 %v3519_v42, %v3518_v38  ;;  %v3521_v51 = vld [vmem:[%s5224_s4 + $0xa8] sm:$0xff]  ;;  %4262 = vmatprep.subr.bf16.mxu0 %v4261_v39 }
 0xd37   : > { %4406 = vpow2.f32 %v2259_v45  ;;  %v2621_v55 = vsub.f32 %v2606_v25, %v2617_v54  ;;  %v3520_v45 = vld [vmem:[%s5224_s4 + $0xa0] sm:$0xff]  ;;  %4264 = vmatpush3.bf16.msra.mxu0 %v4261_v39  ;;  %v3522_v54 = vld [vmem:[%s5224_s4 + $0xb0] sm:$0xff] }
 0xd38   : > { %v2625_v56 = vmul.f32 1.442695, %v2622_v53  ;;  %4266 = vmatprep.subr.bf16.mxu0 %v4265_v43  ;;  %v4269_v53 = vpack.c.bf16 %v3521_v51, %v3520_v45  ;;  %v3535_v51 = vld [vmem:[%s5226_s6 + $0x1] ss:$0 sm:$0xff] }
 0xd39   : > { %v2623_v57 = vmul.f32 1.442695, %v2621_v55  ;;  %v3523_v55 = vld [vmem:[%s5224_s4 + $0xb8] sm:$0xff] }
 0xd3a   : > { %4408 = vpow2.f32 %v2625_v56  ;;  %v4273_v56 = vpack.c.bf16 %v3523_v55, %v3522_v54 }
 0xd3b   : > { %4410 = vpow2.f32 %v2623_v57  ;;  %4268 = vmatpush3.bf16.msra.mxu0 %v4265_v43  ;;  %v3524_v57 = vld [vmem:[%s5224_s4 + $0xc0] sm:$0xff] }
 0xd3c   : > { %v4401_v58 = vpop.eup %4400  ;;  %4270 = vmatprep.subr.bf16.mxu0 %v4269_v53 }
 0xd3d   : > { %v4403_v59 = vpop.eup %4402  ;;  %v2367_v60 = vsel %vm429_vm0, %v4401_v58, 0.0 }
 0xd3e   : > { %2368 = vadd.xlane.f32.xlu1 %v2367_v60  ;;  %v2364_v46 = vsel %vm429_vm0, %v4403_v59, 0.0  ;;  %v3526_v60 = vld [vmem:[%s5224_s4 + $0xd0] sm:$0xff] }
 0xd3f   : > { %2365 = vadd.xlane.f32.xlu0 %v2364_v46  ;;  %4272 = vmatpush3.bf16.msra.mxu0 %v4269_v53  ;;  %v3527_v46 = vld [vmem:[%s5224_s4 + $0xd8] sm:$0xff] }
 0xd40   : > { %v4405_v62 = vpop.eup %4404  ;;  %4274 = vmatprep.subr.bf16.mxu0 %v4273_v56 }
 0xd41   : > { %v4407_v47 = vpop.eup %4406  ;;  %v2266_v63 = vsel %vm429_vm0, %v4405_v62, 0.0 }
 0xd42   : > { %2267 = vadd.xlane.f32.xlu1 %v2266_v63  ;;  %v2263_v61 = vsel %vm429_vm0, %v4407_v47, 0.0  ;;  %v3529_v63 = vld [vmem:[%s5224_s4 + $0xe8] sm:$0xff] }
 0xd43   : > { %2264 = vadd.xlane.f32.xlu0 %v2263_v61  ;;  %4276 = vmatpush3.bf16.msra.mxu0 %v4273_v56 }
 0xd44   : > { %v4409_v0 = vpop.eup %4408 }
 0xd45   : > { %v4411_v2 = vpop.eup %4410  ;;  %v2630_v1 = vsel %vm429_vm0, %v4409_v0, 0.0 }
 0xd46   : > { %2631 = vadd.xlane.f32.xlu1 %v2630_v1  ;;  %v2627_v4 = vsel %vm429_vm0, %v4411_v2, 0.0 }
 0xd47   : > { %2628 = vadd.xlane.f32.xlu0 %v2627_v4 }
 0xdcb   : > { %v2369_v12 = vpop.xlane.xlu1 %2368 }
 0xdcc   : > { %4412 = vrcp.f32 %v2369_v12  ;;  %v2366_v13 = vpop.xlane.xlu0 %2365 }
 0xdcd   : > { %4414 = vrcp.f32 %v2366_v13 }
 0xdcf   : > { %v2268_v11 = vpop.xlane.xlu1 %2267 }
 0xdd0   : > { %v2265_v10 = vpop.xlane.xlu0 %2264 }
 0xdd1   : > { %4416 = vrcp.f32 %v2265_v10 }
 0xdd2   : > { %4418 = vrcp.f32 %v2268_v11 }
 0xdd3   : > { %v2632_v48 = vpop.xlane.xlu1 %2631 }
 0xdd4   : > { %v2629_v14 = vpop.xlane.xlu0 %2628 }
 0xdd5   : > { %4420 = vrcp.f32 %v2629_v14 }
 0xdd6   : > { %v4413_v3 = vpop.eup %4412  ;;  %4422 = vrcp.f32 %v2632_v48 }
 0xdd7   : > { %v4415_v44 = vpop.eup %4414  ;;  %v2373_v15 = vmul.f32 %v4413_v3, %v4401_v58  ;;  %v3525_v58 = vld [vmem:[%s5224_s4 + $0xc8] sm:$0xff] }
 0xdd8   : > { %v2372_v16 = vmul.f32 %v4415_v44, %v4403_v59  ;;  %v4277_v59 = vpack.c.bf16 %v3525_v58, %v3524_v57  ;;  %v3537_v57 = vld [vmem:[%s5227_s7 + $0x1] ss:$0 sm:$0xff] }
 0xdda   : > { %3936 = vmatprep.mubr.msk.f32.mxu1 %vm429_vm0, %v2372_v16  ;;  %4278 = vmatprep.subr.bf16.mxu0 %v4277_v59 }
 0xddb   : > { %v4417_v49 = vpop.eup %4416  ;;  %3937 = vmatmul.mubr.msk.f32.vlgmr.msra.gmra.mrb[20].mxu1 %vm429_vm0, %v2373_v15  ;;  %4280 = vmatpush3.bf16.msra.mxu0 %v4277_v59  ;;  %v3533_v15 = vld [vmem:[%s5225_s5 + $0x1] ss:$0 sm:$0xff] }
 0xddc   : > { %4244 = vmatpush3.bf16.msra.mxu1 %v5007_v18  ;;  %v2271_v50 = vmul.f32 %v4417_v49, %v4407_v47  ;;  %v4419_v52 = vpop.eup %4418  ;;  %v3528_v47 = vld [vmem:[%s5224_s4 + $0xe0] sm:$0xff] }
 0xddd   : > { %4250 = vmatprep.subr.bf16.mxu1 %v5009_v41  ;;  %v2272_v9 = vmul.f32 %v4419_v52, %v4405_v62  ;;  %v4281_v62 = vpack.c.bf16 %v3527_v46, %v3526_v60  ;;  %v4285_v61 = vpack.c.bf16 %v3529_v63, %v3528_v47  ;;  %v3548_v46 = vld [vmem:[%s5230_s10 + $0x90] sm:$0xff]  ;;  %v3550_v63 = vld [vmem:[%s5230_s10 + $0xa0] sm:$0xff] }
 0xdde   : > { %3943 = vmatprep.mubr.msk.f32.mxu1 %vm429_vm0, %v2271_v50 }
 0xddf   : > { %v4421_v21 = vpop.eup %4420  ;;  %4282 = vmatprep.subr.bf16.mxu0 %v4281_v62 }
 0xde0   : > { %v2635_v5 = vmul.f32 %v4421_v21, %v4411_v2  ;;  %v4423_v23 = vpop.eup %4422  ;;  %v3531_v2 = vld [vmem:[%s5224_s4 + $0xf8] sm:$0xff]  ;;  %4284 = vmatpush3.bf16.msra.mxu0 %v4281_v62 }
 0xde1   : > { %v2636_v24 = vmul.f32 %v4423_v23, %v4409_v0  ;;  %v3530_v0 = vld [vmem:[%s5224_s4 + $0xf0] sm:$0xff]  ;;  %4286 = vmatprep.subr.bf16.mxu0 %v4285_v61  ;;  %v3549_v62 = vld [vmem:[%s5230_s10 + $0x98] sm:$0xff] }
 0xde2   : > { %v4289_v1 = vpack.c.bf16 %v3531_v2, %v3530_v0  ;;  %v4305_v47 = vpack.c.bf16 %v3549_v62, %v3548_v46  ;;  %v3552_v2 = vld [vmem:[%s5230_s10 + $0xb0] sm:$0xff] }
 0xde3   : > { %3944 = vmatmul.mubr.msk.f32.vlgmr.msra.gmra.mrb[20].mxu1 %vm429_vm0, %v2272_v9 }
 0xde4   : > { %4252 = vmatpush3.bf16.msra.mxu1 %v5009_v41  ;;  %3957 = vmatprep.mubr.msk.f32.mxu1 %vm429_vm0, %v2635_v5 }
 0xde5   : > { %4254 = vmatprep.subr.bf16.mxu1 %v5013_v20  ;;  %4288 = vmatpush3.bf16.msra.mxu0 %v4285_v61  ;;  %v3551_v61 = vld [vmem:[%s5230_s10 + $0xa8] sm:$0xff] }
 0xde6   : > { %4290 = vmatprep.subr.bf16.mxu0 %v4289_v1  ;;  %v4309_v0 = vpack.c.bf16 %v3551_v61, %v3550_v63 }
 0xde9   : > { %4292 = vmatpush3.bf16.msra.mxu0 %v4289_v1  ;;  %v3553_v1 = vld [vmem:[%s5230_s10 + $0xb8] sm:$0xff] }
 0xdeb   : > { %3958 = vmatmul.mubr.msk.f32.vlgmr.msra.gmra.mrb[20].mxu1 %vm429_vm0, %v2636_v24 }
 0xdec   : > { %3964 = vmatprep.mubr.f32.mxu1 %v4979_v32 }
 0xded   : > { %4256 = vmatpush3.bf16.xpose.msra.mxu1 %v5013_v20 }
 0xdee   : > { %4258 = vmatprep.subr.bf16.mxu1 %v5011_v40 }
 0xdf4   : > { %3965 = vmatmul.mubr.f32.vlgmr.msra.gmra.mrb[22].mxu1 %v4985_v37 }
 0xdf5   : > { %4260 = vmatpush3.bf16.msra.mxu1 %v5011_v40 }
 0xec7   : > { %v3966_v18 = vpop.f32.mrb[22].mxu1 }
 0xec8   : > { %v2790_v41 = vpop.f32.mrb[23].mxu1  ;;  %v2802_v25 = vsel %vm429_vm0, %v3966_v18, -inf }
 0xec9   : > { %2803 = vmax.xlane.f32.xlu1 %v2802_v25  ;;  %v2799_v26 = vsel %vm429_vm0, %v2790_v41, -inf }
 0xeca   : > { %2800 = vmax.xlane.f32.xlu0 %v2799_v26 }
 0xf56   : > { %v2804_v27 = vpop.xlane.xlu1 %2803 }
 0xf57   : > { %v2806_v28 = vsub.f32 %v3966_v18, %v2804_v27  ;;  %v2801_v29 = vpop.xlane.xlu0 %2800 }
 0xf58   : > { %v2805_v32 = vsub.f32 %v2790_v41, %v2801_v29  ;;  %v3539_v29 = vld [vmem:[%s5228_s8 + $0x28] sm:$0xff] }
 0xf59   : > { %v2809_v31 = vmul.f32 1.442695, %v2806_v28  ;;  %v3538_v28 = vld [vmem:[%s5228_s8 + $0x20] sm:$0xff] }
 0xf5a   : > { %v2807_v20 = vmul.f32 1.442695, %v2805_v32  ;;  %v4293_v32 = vpack.c.bf16 %v3539_v29, %v3538_v28 }
 0xf5b   : > { %4424 = vpow2.f32 %v2809_v31  ;;  %v3540_v31 = vld [vmem:[%s5228_s8 + $0x30] sm:$0xff] }
 0xf5c   : > { %4426 = vpow2.f32 %v2807_v20  ;;  %4294 = vmatprep.subr.bf16.mxu1 %v4293_v32  ;;  %v3541_v20 = vld [vmem:[%s5228_s8 + $0x38] sm:$0xff] }
 0xf65   : > { %v4425_v33 = vpop.eup %4424 }
 0xf66   : > { %v4427_v37 = vpop.eup %4426  ;;  %v2814_v40 = vsel %vm429_vm0, %v4425_v33, 0.0 }
 0xf67   : > { %2815 = vadd.xlane.f32.xlu1 %v2814_v40  ;;  %v2811_v34 = vsel %vm429_vm0, %v4427_v37, 0.0  ;;  %v3547_v40 = vld [vmem:[%s5230_s10 + $0x88] sm:$0xff] }
 0xf68   : > { %2812 = vadd.xlane.f32.xlu0 %v2811_v34 }
 0xff4   : > { %v2816_v4 = vpop.xlane.xlu1 %2815 }
 0xff5   : > { %4428 = vrcp.f32 %v2816_v4  ;;  %v2813_v12 = vpop.xlane.xlu0 %2812  ;;  %v4313_v4 = vpack.c.bf16 %v3553_v1, %v3552_v2 }
 0xff6   : > { %4430 = vrcp.f32 %v2813_v12  ;;  %v3554_v12 = vld [vmem:[%s5230_s10 + $0xc0] sm:$0xff] }
 0xfff   : > { %v4429_v13 = vpop.eup %4428 }
0x1000   : > { %v4431_v10 = vpop.eup %4430  ;;  %v2820_v14 = vmul.f32 %v4429_v13, %v4425_v33  ;;  %v4297_v33 = vpack.c.bf16 %v3541_v20, %v3540_v31  ;;  %v3555_v13 = vld [vmem:[%s5230_s10 + $0xc8] sm:$0xff] }
0x1001   : > { %v2819_v11 = vmul.f32 %v4431_v10, %v4427_v37  ;;  %v3546_v37 = vld [vmem:[%s5230_s10 + $0x80] sm:$0xff]  ;;  %v3556_v10 = vld [vmem:[%s5230_s10 + $0xd0] sm:$0xff] }
0x1002   : > { %v4301_v34 = vpack.c.bf16 %v3547_v40, %v3546_v37 }
0x1003   : > { %3971 = vmatprep.mubr.msk.f32.mxu1 %vm429_vm0, %v2819_v11  ;;  %v4317_v11 = vpack.c.bf16 %v3555_v13, %v3554_v12 }
0x1004   : > { %3972 = vmatmul.mubr.msk.f32.vlgmr.msra.gmra.mrb[20].mxu1 %vm429_vm0, %v2820_v14  ;;  %v3557_v14 = vld [vmem:[%s5230_s10 + $0xd8] sm:$0xff] }
0x1005   : > { %4296 = vmatpush3.bf16.msra.mxu1 %v4293_v32 }
0x1006   : > { %4298 = vmatprep.subr.bf16.mxu1 %v4297_v33 }
0x1009   : > { %4300 = vmatpush3.bf16.msra.mxu1 %v4297_v33 }
0x100a   : > { %4302 = vmatprep.subr.bf16.mxu1 %v4301_v34 }
0x10d7   : > { %v3973_v3 = vpop.f32.mrb[20].mxu1 }
0x10d8   : > { %v2895_v44 = vpop.f32.mrb[21].mxu1 }
0x10d9   : > { %4006 = vmatprep.mubr.f32.mxu0 %v2895_v44  ;;  %v3558_v44 = vld [vmem:[%s5230_s10 + $0xe0] sm:$0xff] }
0x10da   : > { %4007 = vmatmul.mubr.f32.vlgmr.msra.gmra.mrb[24].mxu0 %v3973_v3  ;;  %v4321_v3 = vpack.c.bf16 %v3557_v14, %v3556_v10 }
0x10db   : > { %4059 = vmatprep.mubr.msk.f32.mxu0 %vm567_vm4, %v4568_v17 }
0x11ad   : > { %v4008_v16 = vpop.f32.mrb[24].mxu0 }
0x11ae   : > { %v2999_v48 = vadd.f32 %v4008_v16, %v4957_v22  ;;  %v2989_v49 = vpop.f32.mrb[25].mxu0  ;;  %v3559_v16 = vld [vmem:[%s5230_s10 + $0xe8] sm:$0xff] }
0x11af   : > { %v2998_v50 = vadd.f32 %v2989_v49, %v4940_v19  ;;  %v3561_v49 = vld [vmem:[%s5230_s10 + $0xf8] sm:$0xff] }
0x11b0   : > { %v5108_v52 = vadd.f32 %v3533_v15, %v2999_v48  ;;  %v3560_v48 = vld [vmem:[%s5230_s10 + $0xf0] sm:$0xff] }
0x11b1   : > { %v5110_v21 = vadd.f32 %v3533_v15, %v2998_v50  ;;  %v4325_v15 = vpack.c.bf16 %v3559_v16, %v3558_v44  ;;  %v4329_v50 = vpack.c.bf16 %v3561_v49, %v3560_v48 }
0x11b2   : > { %v3013_v9 = vsel %vm567_vm4, %v5108_v52, 0.0 }
0x11b3   : > { %3014 = vadd.xlane.f32.xlu1 %v3013_v9  ;;  %v3010_v17 = vsel %vm567_vm4, %v5110_v21, 0.0  ;;  %v3543_v9 = vld [vmem:[%s5229_s9 + $0x1] ss:$0 sm:$0xff] }
0x11b4   : > { %3011 = vadd.xlane.f32.xlu0 %v3010_v17 }
0x1240   : > { %v3015_v5 = vpop.xlane.xlu1 %3014 }
0x1241   : > { %v3017_v23 = vmul.f32 0.03125, %v3015_v5  ;;  %v3012_v24 = vpop.xlane.xlu0 %3011 }
0x1242   : > { %v3016_v18 = vmul.f32 0.03125, %v3012_v24 }
0x1243   : > { %v3019_v22 = vsub.f32 %v5108_v52, %v3017_v23 }
0x1244   : > { %v3018_v19 = vsub.f32 %v5110_v21, %v3016_v18 }
0x1245   : > { %v3021_v41 = vmul.f32 %v3019_v22, %v3019_v22 }
0x1246   : > { %v3020_v25 = vmul.f32 %v3018_v19, %v3018_v19 }
0x1247   : > { %v3025_v26 = vsel %vm567_vm4, %v3021_v41, 0.0 }
0x1248   : > { %3026 = vadd.xlane.f32.xlu1 %v3025_v26  ;;  %v3022_v27 = vsel %vm567_vm4, %v3020_v25, 0.0 }
0x1249   : > { %3023 = vadd.xlane.f32.xlu0 %v3022_v27 }
0x12d5   : > { %v3027_v35 = vpop.xlane.xlu1 %3026 }
0x12d6   : > { %v3029_v36 = vmul.f32 0.03125, %v3027_v35  ;;  %v3024_v38 = vpop.xlane.xlu0 %3023 }
0x12d7   : > { %v3028_v39 = vmul.f32 0.03125, %v3024_v38 }
0x12d8   : > { %v3031_v42 = vadd.f32 1e-05, %v3029_v36 }
0x12d9   : > { %v3030_v43 = vadd.f32 1e-05, %v3028_v39  ;;  %v3563_v39 = vld [vmem:[%s5231_s11 + $0x1] ss:$0 sm:$0xff] }
0x12da   : > { %4432 = vrsqrt.f32 %v3031_v42 }
0x12db   : > { %4434 = vrsqrt.f32 %v3030_v43 }
0x12e4   : > { %v4433_v45 = vpop.eup %4432 }
0x12e5   : > { %v4435_v53 = vpop.eup %4434  ;;  %v3035_v54 = vmul.f32 %v4433_v45, %v3019_v22 }
0x12e6   : > { %v3034_v55 = vmul.f32 %v4435_v53, %v3018_v19 }
0x12e7   : > { %v3045_v56 = vmul.f32 %v3535_v51, %v3035_v54 }
0x12e8   : > { %v3044_v58 = vmul.f32 %v3535_v51, %v3034_v55  ;;  %v3272_v55 = vadd.s32 16, %v4537_v7 }
0x12e9   : > { %v3055_v60 = vadd.f32 %v3537_v57, %v3045_v56  ;;  %v3273_v56 = vadd.s32 24, %v4537_v7 }
0x12ea   : > { %v3054_v59 = vadd.f32 %v3537_v57, %v3044_v58  ;;  %vm3274_vm14 = vcmp.eq.s32.totalorder %v3272_v55, %v4539_v8 }
0x12eb   : > { %vm3275_vm15 = vcmp.eq.s32.totalorder %v3273_v56, %v4539_v8 }
0x12ec   : > { %4017 = vmatprep.mubr.msk.f32.mxu1 %vm567_vm4, %v3054_v59 }
0x12ed   : > { %4018 = vmatmul.mubr.msk.f32.vlgmr.msra.gmra.mrb[24].mxu1 %vm567_vm4, %v3055_v60 }
0x12ee   : > { %4304 = vmatpush3.bf16.msra.mxu1 %v4301_v34 }
0x12ef   : > { %4306 = vmatprep.subr.bf16.mxu1 %v4305_v47 }
0x12f2   : > { %4308 = vmatpush3.bf16.msra.mxu1 %v4305_v47 }
0x12f3   : > { %4310 = vmatprep.subr.bf16.mxu1 %v4309_v0 }
0x12f6   : > { %4312 = vmatpush3.bf16.msra.mxu1 %v4309_v0 }
0x12f7   : > { %4314 = vmatprep.subr.bf16.mxu1 %v4313_v4 }
0x12fa   : > { %4316 = vmatpush3.bf16.msra.mxu1 %v4313_v4 }
0x12fb   : > { %4318 = vmatprep.subr.bf16.mxu1 %v4317_v11 }
0x12fe   : > { %4320 = vmatpush3.bf16.msra.mxu1 %v4317_v11 }
0x12ff   : > { %4322 = vmatprep.subr.bf16.mxu1 %v4321_v3 }
0x1302   : > { %4324 = vmatpush3.bf16.msra.mxu1 %v4321_v3 }
0x1303   : > { %4326 = vmatprep.subr.bf16.mxu1 %v4325_v15 }
0x1306   : > { %4328 = vmatpush3.bf16.msra.mxu1 %v4325_v15 }
0x1307   : > { %4330 = vmatprep.subr.bf16.mxu1 %v4329_v50 }
0x130a   : > { %4332 = vmatpush3.bf16.msra.mxu1 %v4329_v50 }
0x13c0   : > { %v4019_v17 = vpop.f32.mrb[24].mxu1 }
0x13c1   : > { %v3147_v5 = vadd.f32 %v4019_v17, %v3543_v9  ;;  %v3141_v23 = vpop.f32.mrb[25].mxu1 }
0x13c2   : > { %v3142_v24 = vadd.f32 %v3543_v9, %v3141_v23 }
0x13c3   : > { %v3153_v18 = vmul.f32 0.044715, %v3147_v5  ;;  %v3151_v34 = vmul.f32 0.5, %v3147_v5 }
0x13c4   : > { %v3152_v22 = vmul.f32 0.044715, %v3142_v24  ;;  %v3150_v37 = vmul.f32 0.5, %v3142_v24 }
0x13c5   : > { %v3155_v19 = vmul.f32 %v3153_v18, %v3147_v5 }
0x13c6   : > { %v3154_v41 = vmul.f32 %v3152_v22, %v3142_v24 }
0x13c7   : > { %v3157_v25 = vmul.f32 %v3155_v19, %v3147_v5 }
0x13c8   : > { %v3156_v26 = vmul.f32 %v3154_v41, %v3142_v24 }
0x13c9   : > { %v3159_v27 = vadd.f32 %v3157_v25, %v3147_v5 }
0x13ca   : > { %v3158_v28 = vadd.f32 %v3156_v26, %v3142_v24 }
0x13cb   : > { %v3161_v29 = vmul.f32 0.7978846, %v3159_v27 }
0x13cc   : > { %v3160_v32 = vmul.f32 0.7978846, %v3158_v28 }
0x13cd   : > { %4436 = vtanh.f32 %v3161_v29 }
0x13ce   : > { %4438 = vtanh.f32 %v3160_v32 }
0x13d7   : > { %v4437_v31 = vpop.eup %4436 }
0x13d8   : > { %v4439_v20 = vpop.eup %4438  ;;  %v3165_v33 = vadd.f32 1.0, %v4437_v31 }
0x13d9   : > { %v3164_v40 = vadd.f32 1.0, %v4439_v20 }
0x13da   : > { %v3167_v36 = vmul.f32 %v3165_v33, %v3151_v34 }
0x13db   : > { %v3166_v35 = vmul.f32 %v3164_v40, %v3150_v37 }
0x13dd   : > { %4052 = vmatprep.mubr.f32.mxu1 %v3166_v35 }
0x13de   : > { %4053 = vmatmul.mubr.f32.vlgmr.msra.gmra.mrb[26].mxu1 %v3167_v36 }
0x14b1   : > { %v4054_v38 = vpop.f32.mrb[26].mxu1 }
0x14b2   : > { %v3261_v42 = vadd.f32 %v4054_v38, %v5108_v52  ;;  %v3251_v43 = vpop.f32.mrb[27].mxu1  ;;  %v3564_v52 = vsel %vm3274_vm14, 1.0, %v4448_v6 }
0x14b3   : > { %v3260_v45 = vadd.f32 %v3251_v43, %v5110_v21  ;;  %v3565_v21 = vsel %vm3275_vm15, 1.0, %v4448_v6 }
0x14b4   : > { %v3271_v51 = vadd.f32 %v3563_v39, %v3261_v42 }
0x14b5   : > { %v3270_v53 = vadd.f32 %v3563_v39, %v3260_v45 }
0x14b7   : > { %v4333_v54 = vpack.c.bf16 %v3271_v51, %v3270_v53 }
0x14b9   : > { %4335 = vmatprep.subr.msk.bf16.mxu0 %vm4334_vm13, %v4333_v54 }
0x14ba   : > { %4338 = vmatpush3.bf16.xpose.msk.msra.mxu0 %vm4334_vm13, %v4333_v54 }
0x14c1   : > { %4060 = vmatmul.mubr.msk.f32.vlgmr.msra.gmra.mrb[26].mxu0 %vm567_vm4, %v4595_v30 }
0x14c2   : > { %4062 = vmatprep.mubr.msk.f32.mxu0 %vm567_vm4, %v3564_v52 }
0x14c5   : > { %4063 = vmatmul.mubr.msk.f32.gmra.mrb[28].mxu0 %vm567_vm4, %v3565_v21 }
0x1594   : > { %v4061_v7 = vpop.f32.mrb[26].mxu0 }
0x1595   : > { %3382 = vst.msk [vmem:[%s413_s25 + $0x8] sm:$0xff] %vm429_vm0, %v4061_v7  ;;  %v3362_v57 = vpop.f32.mrb[27].mxu0 }
0x1596   : > { %3381 = vst.msk [vmem:[%s413_s25] sm:$0xff] %vm429_vm0, %v3362_v57 }
0x1598   : > { %v4064_v8 = vpop.f32.mrb[28].mxu0 }
0x1599   : > { %3384 = vst.msk [vmem:[%s413_s25 + $0x18] sm:$0xff] %vm429_vm0, %v4064_v8  ;;  %v3372_v30 = vpop.f32.mrb[29].mxu0 }
0x159a   : > { %3383 = vst.msk [vmem:[%s413_s25 + $0x10] sm:$0xff] %vm429_vm0, %v3372_v30 }
0x159b PF: > { %s22_s21 = sadd.s32 1, %s4446_s21  }
0x159c   : > { %p19_p4 = scmp.ge.s32.totalorder %s22_s21, 4  }
0x159e   :  { %21 = sbr.rel (!%p19_p4) target bundleno = 1 (0x1), region = 107 }

</bundles_post_ra>
